<compile_context>
chip_gen: v7x
topology: tpu7x:2x2x1
jax: 0.10.0
libtpu: 0.0.40
codegen_flags: <defaults>
</compile_context>

<pallas_src>
import functools

import jax
import jax.numpy as jnp
from jax.experimental import pallas as pl
from jax.experimental.pallas import tpu as pltpu


def _round_up(x, m):
    return ((x + m - 1) // m) * m


def _tisas_packed_kernel(tqk_ref, table_ref, out_ref, *, clip, v_pad, g_pack,
                         chunk):
    """One grid step: gather `tbg` packed rows of relative-time embeddings.

    tqk_ref  : VMEM i32[tbg, 2G]   lanes [0:G)=key times, [G:2G)=query time
    table_ref: VMEM f32[G*Vp, G*H] block-diagonal embedding table
    out_ref  : VMEM f32[tbg, G*H]  packed output rows (G embeddings per row)
    """
    tbg = out_ref.shape[0]
    n_chunks = tbg // chunk

    def body(c, carry):
        c0 = pl.multiple_of(c * chunk, chunk)
        blk = tqk_ref[pl.ds(c0, chunk), :]                     # (chunk, 2G)
        tk = blk[:, :g_pack]                                   # key times
        tq = blk[:, g_pack:2 * g_pack]                         # query time
        # |t_q - t_k| clamped to clip -> embedding index per (row, g).
        diff = jnp.minimum(jnp.abs(tq - tk), clip)             # (chunk, G)

        # One-hot over the block-diagonal vocabulary: piece g occupies lanes
        # [g*Vp, (g+1)*Vp).  Vp is a multiple of 128, so the lane concat is a
        # pure placement (no cross-lane shuffles).
        col = jax.lax.broadcasted_iota(jnp.int32, (chunk, v_pad), 1)
        pieces = [(diff[:, g:g + 1] == col).astype(table_ref.dtype)
                  for g in range(g_pack)]
        onehot = pieces[0] if g_pack == 1 else jnp.concatenate(pieces, axis=-1)

        # Gather == one-hot @ block-diagonal table on the MXU.  HIGHEST
        # precision makes the f32 selection exact (one-hot entries are
        # bf16-exact 0/1, the 3-way split of the table sums back exactly).
        res = jnp.dot(onehot, table_ref[...],
                      preferred_element_type=jnp.float32,
                      precision=jax.lax.Precision.HIGHEST)     # (chunk, G*H)
        out_ref[pl.ds(c0, chunk), :] = res.astype(out_ref.dtype)
        return carry

    jax.lax.fori_loop(0, n_chunks, body, 0)


def tisas_relative_time_embedding(timestamps, emb_table, time_difference_clip,
                                  *, tile_rows=4096, chunk_rows=512):
    """Pallas equivalent of TiSasRelativeTimeEmbedding.forward.

    timestamps : (B, L) integer timestamps
    emb_table  : (clip + 1, H) nn.Embedding weight
    returns    : (B, L, L, H)
    """
    B, L = timestamps.shape
    V, H = emb_table.shape
    assert V == time_difference_clip + 1, "table must have clip+1 rows"

    # ---- packing geometry: G key positions per 128-lane output row --------
    g_pack = 128 // H if (H < 128 and 128 % H == 0) else 1
    P = g_pack * H                      # packed lane width (=128 when packing)
    v_pad = _round_up(V, 128)           # lane-aligned per-block vocabulary
    K = g_pack * v_pad                  # contraction dim of the matmul

    # ---- timestamps -> int32 (rebase wide ints; diffs are shift-invariant) -
    t = timestamps
    if jnp.dtype(t.dtype).itemsize > 4:
        t = t - jnp.min(t)
    t32 = t.astype(jnp.int32)

    # ---- layout prep (no forward arithmetic): one merged int32 operand ----
    # Row r <-> (b, i, jg); lanes [0:G) = t[b, jg*G + g], lanes [G:2G) = t[b, i].
    Lpj = _round_up(L, g_pack)
    tk_pad = jnp.pad(t32, ((0, 0), (0, Lpj - L)))
    n_jg = Lpj // g_pack
    tk_g = jnp.broadcast_to(tk_pad.reshape(B, 1, n_jg, g_pack),
                            (B, L, n_jg, g_pack))
    tq_g = jnp.broadcast_to(t32.reshape(B, L, 1, 1), (B, L, n_jg, g_pack))
    tqk = jnp.concatenate([tk_g, tq_g], axis=-1).reshape(B * L * n_jg,
                                                         2 * g_pack)

    n_rows = B * L * n_jg
    tbg = min(tile_rows, _round_up(n_rows, 8))
    chunk = min(chunk_rows, tbg)
    tbg = _round_up(tbg, chunk)                 # inner loop divides evenly
    n_rows_pad = _round_up(n_rows, tbg)
    if n_rows_pad != n_rows:
        tqk = jnp.pad(tqk, ((0, n_rows_pad - n_rows), (0, 0)))

    # ---- block-diagonal table: (g*Vp + v, g*H + h) = emb[v, h] -------------
    table_bd = jnp.zeros((K, P), dtype=emb_table.dtype)
    for g in range(g_pack):
        table_bd = table_bd.at[g * v_pad:g * v_pad + V,
                               g * H:(g + 1) * H].set(emb_table)

    out_dtype = emb_table.dtype
    itemsize = jnp.dtype(out_dtype).itemsize
    cost = pl.CostEstimate(
        flops=2 * n_rows_pad * K * P,
        transcendentals=0,
        bytes_accessed=(n_rows_pad * 2 * g_pack * 4
                        + K * P * itemsize
                        + n_rows_pad * P * itemsize))

    out = pl.pallas_call(
        functools.partial(_tisas_packed_kernel, clip=time_difference_clip,
                          v_pad=v_pad, g_pack=g_pack, chunk=chunk),
        out_shape=jax.ShapeDtypeStruct((n_rows_pad, P), out_dtype),
        grid_spec=pltpu.PrefetchScalarGridSpec(
            num_scalar_prefetch=0,
            grid=(n_rows_pad // tbg,),
            in_specs=[
                # merged timestamp columns: one small input DMA per step
                pl.BlockSpec((tbg, 2 * g_pack), lambda i: (i, 0)),
                # tiny table, constant index_map -> fetched once, VMEM-resident
                pl.BlockSpec((K, P), lambda i: (0, 0)),
            ],
            out_specs=pl.BlockSpec((tbg, P), lambda i: (i, 0)),
        ),
        compiler_params=pltpu.CompilerParams(
            dimension_semantics=("parallel",),
            vmem_limit_bytes=32 * 1024 * 1024,
        ),
        cost_estimate=cost,
    )(tqk, table_bd)

    # Free view back to (B, L, L, H): packed lanes are (g, h)-ordered, so the
    # reshape is row-major contiguous; only the key-padding slice copies.
    out = out[:n_rows].reshape(B, L, n_jg, g_pack, H).reshape(B, L, Lpj, H)
    return out[:, :, :L, :]


if __name__ == "__main__":
    # Module hyperparameters (args.tisas_max_time_intervals, args.hidden_units)
    # at small test shapes.
    time_difference_clip = 64
    hidden = 32
    batch, seq = 2, 10

    key = jax.random.PRNGKey(0)
    k_emb, k_t = jax.random.split(key)

    emb_table = jax.random.normal(
        k_emb, (time_difference_clip + 1, hidden), dtype=jnp.float32)
    # Integer timestamps spread widely so some |diffs| exceed the clip.
    timestamps = jax.random.randint(k_t, (batch, seq), 0, 500, dtype=jnp.int32)

    # Small tiles so the tiny test exercises several grid steps, the inner
    # chunk loop and the row/key padding paths (production defaults are
    # tile_rows=4096, chunk_rows=512).
    out = tisas_relative_time_embedding(
        timestamps, emb_table, time_difference_clip,
        tile_rows=16, chunk_rows=8)
    out = jax.block_until_ready(out)

    # Pure-JAX reference mirroring the PyTorch forward.
    td = jnp.minimum(
        jnp.abs(timestamps[:, :, None] - timestamps[:, None, :]),
        time_difference_clip)
    ref = jnp.take(emb_table, td, axis=0)

    assert out.shape == (batch, seq, seq, hidden)
    assert out.dtype == jnp.float32
    assert jnp.allclose(out, ref, atol=1e-6, rtol=1e-6), "mismatch vs reference"
    print("KERNEL_OK")
</pallas_src>

<mosaic_0001>
module attributes {stable_mosaic.version = 11 : i64} {
  func.func @_tisas_packed_kernel(%arg0: i32, %arg1: memref<16x8xi32, #tpu.memory_space<vmem>>, %arg2: memref<512x128xf32, #tpu.memory_space<vmem>>, %arg3: memref<16x128xf32, #tpu.memory_space<vmem>>) attributes {dimension_semantics = [#tpu.dimension_semantics<parallel>], iteration_bounds = array<i64: 4>, scalar_prefetch = 0 : i64, scratch_operands = 0 : i64, tpu.core_type = #tpu.core_type<tc>, window_params = [{transform_indices = @transform_0, window_bounds = array<i64: 16, 8>}, {pipeline_mode = #tpu.pipeline_mode<synchronous>, transform_indices = @transform_1, window_bounds = array<i64: 512, 128>}, {transform_indices = @transform_2, window_bounds = array<i64: 16, 128>}]} {
    %c0_i32 = arith.constant 0 : i32
    %c2_i32 = arith.constant 2 : i32
    %0 = arith.addi %c0_i32, %c2_i32 : i32
    %c1_i32 = arith.constant 1 : i32
    scf.for %arg4 = %c0_i32 to %0 step %c1_i32  : i32 {
      %c8_i32 = arith.constant 8 : i32
      %1 = arith.muli %arg4, %c8_i32 : i32
      %2 = tpu.assume_multiple %1, 8 : i32
      %3 = arith.index_cast %2 : i32 to index
      %c0 = arith.constant 0 : index
      %4 = vector.load %arg1[%3, %c0] : memref<16x8xi32, #tpu.memory_space<vmem>>, vector<8x8xi32>
      %5 = vector.extract_strided_slice %4 {offsets = [0, 0], sizes = [8, 4], strides = [1, 1]} : vector<8x8xi32> to vector<8x4xi32>
      %6 = vector.extract_strided_slice %4 {offsets = [0, 4], sizes = [8, 4], strides = [1, 1]} : vector<8x8xi32> to vector<8x4xi32>
      %7 = arith.subi %6, %5 : vector<8x4xi32>
      %8 = math.absi %7 : vector<8x4xi32>
      %c64_i32 = arith.constant 64 : i32
      %9 = vector.broadcast %c64_i32 : i32 to vector<8x4xi32>
      %10 = arith.minsi %8, %9 : vector<8x4xi32>
      %11 = tpu.iota {dimensions = array<i32: 1>} : vector<8x128xi32>
      %12 = vector.extract_strided_slice %10 {offsets = [0, 0], sizes = [8, 1], strides = [1, 1]} : vector<8x4xi32> to vector<8x1xi32>
      %13 = vector.broadcast %12 : vector<8x1xi32> to vector<8x128xi32>
      %14 = arith.cmpi eq, %13, %11 : vector<8x128xi32>
      %15 = arith.extui %14 : vector<8x128xi1> to vector<8x128xi32>
      %16 = arith.sitofp %15 : vector<8x128xi32> to vector<8x128xf32>
      %17 = vector.extract_strided_slice %10 {offsets = [0, 1], sizes = [8, 1], strides = [1, 1]} : vector<8x4xi32> to vector<8x1xi32>
      %18 = vector.broadcast %17 : vector<8x1xi32> to vector<8x128xi32>
      %19 = arith.cmpi eq, %18, %11 : vector<8x128xi32>
      %20 = arith.extui %19 : vector<8x128xi1> to vector<8x128xi32>
      %21 = arith.sitofp %20 : vector<8x128xi32> to vector<8x128xf32>
      %22 = vector.extract_strided_slice %10 {offsets = [0, 2], sizes = [8, 1], strides = [1, 1]} : vector<8x4xi32> to vector<8x1xi32>
      %23 = vector.broadcast %22 : vector<8x1xi32> to vector<8x128xi32>
      %24 = arith.cmpi eq, %23, %11 : vector<8x128xi32>
      %25 = arith.extui %24 : vector<8x128xi1> to vector<8x128xi32>
      %26 = arith.sitofp %25 : vector<8x128xi32> to vector<8x128xf32>
      %27 = vector.extract_strided_slice %10 {offsets = [0, 3], sizes = [8, 1], strides = [1, 1]} : vector<8x4xi32> to vector<8x1xi32>
      %28 = vector.broadcast %27 : vector<8x1xi32> to vector<8x128xi32>
      %29 = arith.cmpi eq, %28, %11 : vector<8x128xi32>
      %30 = arith.extui %29 : vector<8x128xi1> to vector<8x128xi32>
      %31 = arith.sitofp %30 : vector<8x128xi32> to vector<8x128xf32>
      %32 = tpu.concatenate %16, %21, %26, %31 in 1 : vector<8x128xf32>, vector<8x128xf32>, vector<8x128xf32>, vector<8x128xf32> -> vector<8x512xf32>
      %c0_1 = arith.constant 0 : index
      %c0_2 = arith.constant 0 : index
      %33 = vector.load %arg2[%c0_1, %c0_2] : memref<512x128xf32, #tpu.memory_space<vmem>>, vector<512x128xf32>
      %cst = arith.constant dense<0.000000e+00> : vector<8x128xf32>
      %34 = tpu.matmul %32, %33, %cst {dimension_numbers = #tpu.dot_dimension_numbers<[1], [0], [0], [1], [0, 0, 1, 1], [], []>, precision = #tpu.contract_precision<fp32>} : vector<8x512xf32>, vector<512x128xf32>, vector<8x128xf32> -> vector<8x128xf32>
      %35 = arith.index_cast %2 : i32 to index
      %c0_3 = arith.constant 0 : index
      %36 = vector.load %arg3[%35, %c0_3] : memref<16x128xf32, #tpu.memory_space<vmem>>, vector<8x128xf32>
      tpu.vector_store %arg3[%35, %c0_3], %34 {strides = array<i32>} : memref<16x128xf32, #tpu.memory_space<vmem>>, vector<8x128xf32>,
    }
    %c2_i32_0 = arith.constant 2 : i32
    return
  }
  func.func @transform_0(%arg0: i32) -> (i32, i32) {
    %c0_i32 = arith.constant 0 : i32
    %c0_i32_0 = arith.constant 0 : i32
    return %arg0, %c0_i32 : i32, i32
  }
  func.func @transform_1(%arg0: i32) -> (i32, i32) {
    %c0_i32 = arith.constant 0 : i32
    %c0_i32_0 = arith.constant 0 : i32
    %c0_i32_1 = arith.constant 0 : i32
    return %c0_i32, %c0_i32_0 : i32, i32
  }
  func.func @transform_2(%arg0: i32) -> (i32, i32) {
    %c0_i32 = arith.constant 0 : i32
    %c0_i32_0 = arith.constant 0 : i32
    return %arg0, %c0_i32 : i32, i32
  }
}

</mosaic_0001>

<bundles_post_ra>
// kernel: tpu_custom_call.1
= control target key start
LH: loop header
LB: loop body
LE: loop exit
PB: predicated region body
PF: predicated region fallthrough
CT: control target
= control target key end

     0   :  { %7 = vsyncpa [#allocation3], 0  ;;  %s4663_s0 = inlined_call_operand.vmem [shape: s32[64,8], index: 0, kind: input, shape index: {}]   ;;  %s4664_s1 = inlined_call_operand.hbm [shape: f32[512,128], index: 1, kind: input, shape index: {}]   ;;  %s4665_s2 = inlined_call_operand.hbm [shape: f32[64,128], index: 2, kind: output, shape index: {}]  }
   0x1   :  { %8 = vsyncpa [#allocation4], 0 }
   0x2   :  { %10 = vsyncpa [#allocation4 + $0x1], 0  ;;  %s3133_s9 = smov 0   ;;  %s3135_s10 = smov 0  }
   0x3   :  { %s3137_s11 = smov 0   ;;  %s3139_s12 = smov 0  }
   0x4 LB: > { %s3154_s13 = sadd.s32 4294967295, %s3099_s12   ;;  %s2090_s14 = sadd.s32 4294967294, %s3099_s12   ;;  %s3099_s12 = sphi %s3139_s12, %s5081_s12   ;;  %s3095_s11 = sphi %s3137_s11, %s5080_s11   ;;  %s3091_s10 = sphi %s3135_s10, %s5079_s10   ;;  %s3087_s9 = sphi %s3133_s9, %s5078_s9  }
   0x5   : > { %s3158_s15 = sadd.s32 1, %s3099_s12   ;;  %s70_s16 = sadd.s32 1, %s3095_s11 }
   0x6   : > { %s67_s17 = ssub.s32 %s3099_s12, %s3158_s15  ;;  %p80_p0 = scmp.ne.s32.totalorder %s3095_s11, %s3091_s10 }
   0x7   : > { %p68_p1 = scmp.eq.s32.totalorder %s67_s17, 0  ;;  %p81_p2 = scmp.eq.s32.totalorder %s3154_s13, 3 }
   0x8   : > { %p86_p3 = scmp.ne.s32.totalorder %s3091_s10, %s3087_s9  ;;  %p87_p4 = scmp.eq.s32.totalorder %s2090_s14, 3 }
   0x9   : > { %s3169_s18 = scalar_select %p68_p1, %s3095_s11, %s70_s16  }
   0xa   : > { %p3171_p5 = por %p81_p2, %p80_p0  ;;  %p3175_p6 = por %p87_p4, %p86_p3 }
   0xb   : > { %p2091_p7 = scmp.ge.s32.totalorder %s3099_s12, 1  ;;  %p94_p8 = scmp.lt.s32.totalorder %s3099_s12, 5 }
   0xc   : > { %s4803_s19 = scalar_select %p3171_p5, 1, 0 }
   0xd   : > { %s4804_s20 = scalar_select %p3175_p6, 1, 0 }
   0xe   : > { %p4666_p9 = scmp.eq.s32.totalorder %s3154_s13, 0  ;;  %p3182_p10 = pnand %p2091_p7, %p94_p8 }
   0xf   : > { %s3105_s22 = smov [#allocation2]   ;;  %s3001_s27 = scalar_lea.hbm %s4664_s1, 8192 }
  0x10   : > { %s4805_s21 = scalar_select %p3182_p10, 1, 0 }
  0x11   : > { %s106_s23 = sshll.u32 %s3105_s22, 4  ;;  %p2933_p11 = pneg %p3182_p10  ;;  %s107_s23 = int_to_ptr.vmem [resolvable:$true] %s106_s23 }
  0x12   : > { %p3002_p13 = scmp.ne.s32.totalorder %s4664_s1, %s3001_s27  ;;  %p3008_p3 = scmp.lt.u32.totalorder %s3001_s27, %s4664_s1 }
  0x13   : > { %p3190_p12 = pnand %p4666_p9, %p2933_p11 }
  0x15   : > { %p3003_p0 = pneg %p3190_p12 }
  0x17   : > { %p3004_p1 = pnand %p3003_p0, %p3002_p13 }
  0x19   : > { %p3005_p2 = pneg %p3004_p1 }
  0x1b   : > { %p3010_p4 = pnand %p3008_p3, %p3005_p2 }
  0x1d   : > { %3013 = shalt.err (!%p3010_p4)
}
  0x1e   : > { %s3014_s4 = scalar_lea.vmem %s107_s23, 8192  ;;  %p3022_p9 = scmp.lt.s32.totalorder %s107_s23, %s107_s23 }
  0x1f   : > { %p3015_p7 = scmp.ne.s32.totalorder %s107_s23, %s3014_s4  ;;  %p3023_p6 = scmp.lt.s32.totalorder %s3014_s4, %s3014_s4 }
  0x21   : > { %p3017_p8 = pnand %p3015_p7, %p3003_p0  ;;  %p3024_p5 = por %p3023_p6, %p3022_p9 }
  0x23   : > { %p3018_p11 = pneg %p3017_p8 }
  0x25   : > { %p3025_p10 = pnand %p3024_p5, %p3018_p11 }
  0x27   : > { %3028 = shalt.err (!%p3025_p10)
}
  0x28   : > { %s3106_s5 = smov 128   ;;  %s3107_s6 = smov 8  }
  0x29   : > { %2936 = dma.hbm_to_vmem [thread:$0]  (!%p3190_p12), %s4664_s1, 8192, %s107_s23, [#allocation3], %s3106_s5, %s3106_s5, %s3107_s6  }
  0x2a   : > { %p4807_p13 = scmp.ne.s32.totalorder %s4805_s21, 0 }
  0x2b   : > { %p4808_p1 = scmp.eq.s32.totalorder (!%p4807_p13), %s3154_s13, 0 }
  0x2c   : > { %131 = sbr.rel (%p4807_p13) target bundleno = 726 (0x2d6), region = 28 }
  0x33   : > { %3078 = dma.done.wait (%p4808_p1), [#allocation3], 8192   ;;  %p4809_p0 = pmov %p4808_p1 }
  0x34   : > { %s150_s14 = sand.u32 1, %s3091_s10   ;;  %s2097_s16 = sshll.u32 %s3154_s13, 1 }
  0x35   : > { %3080 = vsyncadd (%p4809_p0), [#allocation3], 4294959104  ;;  %s3220_s17 = sshll.u32 %s150_s14, 4  ;;  %p154_p5 = scmp.lt.s32.totalorder %s2097_s16, 7 }
  0x36   : > { %s152_s25 = scalar_lea.vmem [#allocation5], %s3220_s17  ;;  %s3228_s26 = smov 0  }
  0x37   : > { %s5083_s16 = smov (!%p154_p5, %s2097_s16), 7 }
  0x38   : > { %s2098_s22 = sshll.u32 %s5083_s16, 3 }
  0x39   : > { %s3225_s24 = scalar_lea.vmem %s4663_s0, %s2098_s22 }
  0x3a LB: >> { %v3108_v0 = vmov 5   ;;  %v3109_v1 = vmov 4   ;;  %s2099_s27 = sshll.u32 %s3103_s26, 3  ;;  %s3110_s29 = smov 4   ;;  %v219_v3 = vld [vmem:[#allocation2 + $0x80] sm:$0xff]  ;;  %v220_v4 = vld [vmem:[#allocation2 + $0x88] sm:$0xff]  ;;  %s3103_s26 = sphi %s3228_s26, %s165_s26  }
  0x3b   : >> { %2996 = vset.pattern.permute.xlu0 %v3108_v0  ;;  %2997 = vset.pattern.permute.xlu1 %v3109_v1  ;;  %s167_s28 = scalar_lea.vmem %s3225_s24, %s2099_s27  ;;  %v3240_v5 = vld [vmem:[#allocation2] sm:$0xff]  ;;  %v316_v6 = vand.u32 4294901760, %v219_v3  ;;  %v319_v7 = vand.u32 4294901760, %v220_v4  ;;  %v3242_v8 = vld [vmem:[#allocation2 + $0x8] sm:$0xff]  ;;  %v3245_v10 = vld [vmem:[#allocation2 + $0x90] sm:$0xff]  ;;  %s1991_s30 = scalar_lea.vmem %s152_s25, %s2099_s27 [#allocation5] }
  0x3c   : >> { %v3237_v2 = vld [vmem:[%s167_s28] sm:$0xff]  ;;  %v268_v9 = vand.u32 4294901760, %v3240_v5  ;;  %v3247_v11 = vld [vmem:[#allocation2 + $0x98] sm:$0xff]  ;;  %v271_v12 = vand.u32 4294901760, %v3242_v8  ;;  %v322_v13 = vand.u32 4294901760, %v3245_v10  ;;  %v3252_v15 = vld [vmem:[#allocation2 + $0x10] sm:$0xff] }
  0x3d   : >> { %169 = vrot.lane.b32.xlu0 %v3237_v2, %s3110_s29  ;;  %v325_v14 = vand.u32 4294901760, %v3247_v11  ;;  %v3254_v16 = vld [vmem:[#allocation2 + $0x18] sm:$0xff]  ;;  %v3256_v17 = vsub.f32 %v219_v3, %v316_v6  ;;  %v3258_v18 = vsub.f32 %v220_v4, %v319_v7  ;;  %v274_v20 = vand.u32 4294901760, %v3252_v15  ;;  %v3316_v41 = vld [vmem:[#allocation2 + $0xa0] sm:$0xff]  ;;  %v3318_v42 = vld [vmem:[#allocation2 + $0xa8] sm:$0xff]  ;;  %s165_s26 = sadd.s32 1, %s3103_s26  }
  0x3e   : >> { %v3263_v19 = vsub.f32 %v3240_v5, %v268_v9  ;;  %v3267_v21 = vsub.f32 %v3242_v8, %v271_v12  ;;  %v3272_v22 = vsub.f32 %v3245_v10, %v322_v13  ;;  %v277_v24 = vand.u32 4294901760, %v3254_v16  ;;  %v3326_v51 = vld [vmem:[#allocation2 + $0x20] sm:$0xff]  ;;  %v3328_v52 = vld [vmem:[#allocation2 + $0x28] sm:$0xff]  ;;  %v3332_v57 = vld [vmem:[#allocation2 + $0xb0] sm:$0xff]  ;;  %p162_p6 = scmp.ge.s32.totalorder %s165_s26, 2  }
  0x3f   : >> { %v3277_v23 = vsub.f32 %v3247_v11, %v325_v14  ;;  %v4688_v25 = vand.u32 4294901760, %v3256_v17  ;;  %v4686_v26 = vand.u32 4294901760, %v3258_v18  ;;  %v3286_v28 = vsub.f32 %v3252_v15, %v274_v20  ;;  %v3334_v58 = vld [vmem:[#allocation2 + $0xb8] sm:$0xff]  ;;  %v3350_v4 = vld [vmem:[#allocation2 + $0x30] sm:$0xff]  ;;  %s2122_s3 = sshll.u32 (%p162_p6), %s3154_s13, 8  ;;  %s2007_s7 = sshll.u32 (%p162_p6), %s152_s25, 4  ;;  %s4618_s7 = int_to_ptr.vmem [resolvable:$true] %s2007_s7 }
  0x40   : >> { %v4684_v27 = vand.u32 4294901760, %v3263_v19  ;;  %v4682_v29 = vand.u32 4294901760, %v3267_v21  ;;  %v4681_v30 = vand.u32 4294901760, %v3272_v22  ;;  %v3294_v32 = vsub.f32 %v3254_v16, %v277_v24  ;;  %s4614_s6 = scalar_lea.hbm (%p162_p6), %s4665_s2, %s2122_s3  ;;  %s4622_s8 = scalar_lea.sflag (%p162_p6), [#allocation4], %s150_s14 }
  0x41   : >> { %v4677_v31 = vand.u32 4294901760, %v3277_v23  ;;  %v495_v33 = vsub.f32 %v3256_v17, %v4688_v25  ;;  %v502_v34 = vsub.f32 %v3258_v18, %v4686_v26  ;;  %v4676_v36 = vand.u32 4294901760, %v3286_v28  ;;  %s3029_s16 = scalar_lea.vmem (%p162_p6), %s4618_s7, 256  ;;  %p5076_p10 = scmp.ne.s32.totalorder (%p162_p6), %s4803_s19, 0 }
  0x42   : >> { %v383_v35 = vsub.f32 %v3263_v19, %v4684_v27  ;;  %v390_v37 = vsub.f32 %v3267_v21, %v4682_v29  ;;  %v509_v38 = vsub.f32 %v3272_v22, %v4681_v30  ;;  %v4675_v40 = vand.u32 4294901760, %v3294_v32  ;;  %v3538_v27 = vld [vmem:[#allocation2 + $0xe0] sm:$0xff]  ;;  %p3030_p9 = scmp.ne.s32.totalorder (%p162_p6), %s4618_s7, %s3029_s16  ;;  %s3115_s13 = smov (%p162_p6), [#allocation5]  }
  0x43   : >> { %v516_v39 = vsub.f32 %v3277_v23, %v4677_v31  ;;  %v496_v43 = vand.u32 4294901760, %v495_v33  ;;  %v503_v44 = vand.u32 4294901760, %v502_v34  ;;  %v397_v46 = vsub.f32 %v3286_v28, %v4676_v36  ;;  %v3442_v31 = vld [vmem:[#allocation2 + $0x48] sm:$0xff]  ;;  %s3033_s22 = sshll.u32 (%p162_p6), %s3115_s13, 4  ;;  %s3034_s22 = int_to_ptr.vmem [resolvable:$false] %s3033_s22 }
  0x44   : >> { %v384_v45 = vand.u32 4294901760, %v383_v35  ;;  %v391_v47 = vand.u32 4294901760, %v390_v37  ;;  %v510_v48 = vand.u32 4294901760, %v509_v38  ;;  %v404_v50 = vsub.f32 %v3294_v32, %v4675_v40  ;;  %p3031_p12 = pnand (%p162_p6), %p3030_p9, %p5076_p10  ;;  %s3035_s21 = scalar_lea.vmem (%p162_p6), %s3034_s22, 512 }
  0x45   : >> { %v517_v49 = vand.u32 4294901760, %v516_v39  ;;  %v2575_v53 = vpack.c.bf16 %v503_v44, %v496_v43  ;;  %v398_v54 = vand.u32 4294901760, %v397_v46  ;;  %v328_v55 = vand.u32 4294901760, %v3316_v41  ;;  %p3036_p3 = scmp.lt.s32.totalorder (%p162_p6), %s4618_s7, %s3034_s22  ;;  %p3037_p4 = scmp.lt.s32.totalorder (%p162_p6), %s3035_s21, %s3029_s16 }
  0x46   : >> { %v331_v56 = vand.u32 4294901760, %v3318_v42  ;;  %v2577_v59 = vpack.c.bf16 %v391_v47, %v384_v45  ;;  %v405_v61 = vand.u32 4294901760, %v404_v50  ;;  %v3336_v62 = vpack.c.bf16 %v319_v7, %v316_v6  ;;  %p3032_p2 = pneg (%p162_p6), %p3031_p12 }
  0x47   : >> { %v2579_v60 = vpack.c.bf16 %v517_v49, %v510_v48  ;;  %2576 = vmatprep.subr.bf16.mxu1 %v2575_v53  ;;  %v3341_v63 = vsub.f32 %v3316_v41, %v328_v55  ;;  %v280_v1 = vand.u32 4294901760, %v3326_v51  ;;  %v283_v3 = vand.u32 4294901760, %v3328_v52  ;;  %p3038_p7 = por (%p162_p6), %p3037_p4, %p3036_p3 }
  0x48   : >> { %v3346_v0 = vsub.f32 %v3318_v42, %v331_v56  ;;  %2578 = vmatpush3.bf16.msra.mxu1 %v2577_v59  ;;  %v2581_v6 = vpack.c.bf16 %v405_v61, %v398_v54  ;;  %2544 = vmatprep.subr.bf16.mxu0 %v3336_v62  ;;  %v3355_v7 = vpack.c.bf16 %v271_v12, %v268_v9  ;;  %v334_v8 = vand.u32 4294901760, %v3332_v57  ;;  %v3371_v9 = vld [vmem:[#allocation2 + $0x38] sm:$0xff] }
  0x49   : >> { %v337_v33 = vand.u32 4294901760, %v3334_v58  ;;  %2580 = vmatprep.subr.bf16.mxu1 %v2579_v60  ;;  %v4674_v34 = vand.u32 4294901760, %v3341_v63  ;;  %v3364_v37 = vsub.f32 %v3326_v51, %v280_v1  ;;  %v3369_v5 = vsub.f32 %v3328_v52, %v283_v3  ;;  %p3039_p8 = pnand (%p162_p6), %p3038_p7, %p3032_p2 }
  0x4a   : >> { %v4673_v35 = vand.u32 4294901760, %v3346_v0  ;;  %2546 = vmatpush3.bf16.msra.mxu0 %v3355_v7  ;;  %v3377_v12 = vsub.f32 %v3332_v57, %v334_v8  ;;  %v3388_v39 = vpack.c.bf16 %v325_v14, %v322_v13  ;;  %v286_v43 = vand.u32 4294901760, %v3350_v4 }
  0x4b   : >> { %v3382_v38 = vsub.f32 %v3334_v58, %v337_v33  ;;  %v523_v44 = vsub.f32 %v3341_v63, %v4674_v34  ;;  %v4670_v46 = vand.u32 4294901760, %v3364_v37  ;;  %v4669_v47 = vand.u32 4294901760, %v3369_v5 }
  0x4c   : >> { %v530_v45 = vsub.f32 %v3346_v0, %v4673_v35  ;;  %2582 = vmatpush3.bf16.msra.mxu1 %v2581_v6  ;;  %v4671_v10 = vand.u32 4294901760, %v3377_v12  ;;  %2548 = vmatprep.subr.bf16.mxu0 %v3388_v39  ;;  %v289_v13 = vand.u32 4294901760, %v3371_v9  ;;  %v3406_v14 = vsub.f32 %v3350_v4, %v286_v43  ;;  %v3426_v6 = vld [vmem:[#allocation2 + $0xc0] sm:$0xff] }
  0x4d   : >> { %v4672_v11 = vand.u32 4294901760, %v3382_v38  ;;  %v524_v48 = vand.u32 4294901760, %v523_v44  ;;  %v411_v50 = vsub.f32 %v3364_v37, %v4670_v46  ;;  %v418_v53 = vsub.f32 %v3369_v5, %v4669_v47  ;;  %v3428_v44 = vld [vmem:[#allocation2 + $0xc8] sm:$0xff] }
  0x4e   : >> { %v531_v49 = vand.u32 4294901760, %v530_v45  ;;  %v537_v54 = vsub.f32 %v3377_v12, %v4671_v10  ;;  %v4679_v60 = vand.u32 4294901760, %v3406_v14  ;;  %v3424_v61 = vsub.f32 %v3371_v9, %v289_v13  ;;  %v3577_v9 = vld [vmem:[#allocation2 + $0xf0] sm:$0xff] }
  0x4f   : >> { %v544_v59 = vsub.f32 %v3382_v38, %v4672_v11  ;;  %v412_v47 = vand.u32 4294901760, %v411_v50  ;;  %v419_v46 = vand.u32 4294901760, %v418_v53  ;;  %v3434_v10 = vpack.c.bf16 %v277_v24, %v274_v20  ;;  %v3436_v11 = vld [vmem:[#allocation2 + $0x40] sm:$0xff]  ;;  %v3453_v24 = vld [vmem:[#allocation2 + $0xd0] sm:$0xff] }
  0x50   : >> { %v2583_v45 = vpack.c.bf16 %v531_v49, %v524_v48  ;;  %v538_v35 = vand.u32 4294901760, %v537_v54  ;;  %v425_v40 = vsub.f32 %v3406_v14, %v4679_v60  ;;  %v4678_v36 = vand.u32 4294901760, %v3424_v61  ;;  %v3455_v49 = vld [vmem:[#allocation2 + $0xd8] sm:$0xff] }
  0x51   : >> { %v545_v34 = vand.u32 4294901760, %v544_v59  ;;  %v2585_v48 = vpack.c.bf16 %v419_v46, %v412_v47  ;;  %2550 = vmatpush3.bf16.msra.mxu0 %v3434_v10  ;;  %v340_v15 = vand.u32 4294901760, %v3426_v6  ;;  %v343_v16 = vand.u32 4294901760, %v3428_v44  ;;  %v3486_v59 = vld [vmem:[#allocation2 + $0x50] sm:$0xff] }
  0x52   : >> { %2584 = vmatprep.subr.bf16.mxu1 %v2583_v45  ;;  %v3451_v20 = vpack.c.bf16 %v331_v56, %v328_v55  ;;  %v426_v53 = vand.u32 4294901760, %v425_v40  ;;  %v432_v46 = vsub.f32 %v3424_v61, %v4678_v36  ;;  %v4696_v47 = vand.u32 4294901760, %v3436_v11 }
  0x53   : >> { %v2587_v50 = vpack.c.bf16 %v545_v34, %v538_v35  ;;  %2586 = vmatpush3.bf16.msra.mxu1 %v2585_v48  ;;  %v3464_v41 = vsub.f32 %v3426_v6, %v340_v15  ;;  %v3469_v42 = vsub.f32 %v3428_v44, %v343_v16  ;;  %v4694_v40 = vand.u32 4294901760, %v3442_v31 }
  0x54   : >> { %2552 = vmatprep.subr.bf16.mxu0 %v3451_v20  ;;  %v3477_v55 = vpack.c.bf16 %v283_v3, %v280_v1  ;;  %v433_v56 = vand.u32 4294901760, %v432_v46  ;;  %v3482_v34 = vsub.f32 %v3436_v11, %v4696_v47  ;;  %v4693_v35 = vand.u32 4294901760, %v3453_v24  ;;  %v3502_v3 = vld [vmem:[#allocation2 + $0x58] sm:$0xff]  ;;  %v3564_v47 = vld [vmem:[#allocation2 + $0x68] sm:$0xff] }
  0x55   : >> { %2588 = vmatprep.subr.bf16.mxu1 %v2587_v50  ;;  %v4690_v54 = vand.u32 4294901760, %v3455_v49  ;;  %v4680_v45 = vand.u32 4294901760, %v3464_v41  ;;  %v4683_v51 = vand.u32 4294901760, %v3469_v42  ;;  %v3493_v52 = vsub.f32 %v3442_v31, %v4694_v40 }
  0x56   : >> { %2554 = vmatpush3.bf16.msra.mxu0 %v3477_v55  ;;  %v3500_v1 = vpack.c.bf16 %v337_v33, %v334_v8  ;;  %v2589_v48 = vpack.c.bf16 %v433_v56, %v426_v53  ;;  %v4685_v50 = vand.u32 4294901760, %v3482_v34  ;;  %v3508_v46 = vsub.f32 %v3453_v24, %v4693_v35 }
  0x57   : >> { %v3513_v36 = vsub.f32 %v3455_v49, %v4690_v54  ;;  %v551_v57 = vsub.f32 %v3464_v41, %v4680_v45  ;;  %v558_v58 = vsub.f32 %v3469_v42, %v4683_v51  ;;  %v4687_v8 = vand.u32 4294901760, %v3493_v52 }
  0x58   : >> { %2556 = vmatprep.subr.bf16.mxu0 %v3500_v1  ;;  %v4689_v33 = vand.u32 4294901760, %v3486_v59  ;;  %2590 = vmatpush3.bf16.msra.mxu1 %v2589_v48  ;;  %v439_v53 = vsub.f32 %v3482_v34, %v4685_v50  ;;  %v4691_v56 = vand.u32 4294901760, %v3508_v46  ;;  %v4695_v45 = vand.u32 4294901760, %v3502_v3 }
  0x59   : >> { %4810 = vst [vmem:[#allocation8_spill] sm:$0xff] %v3513_v36  ;;  %v4692_v60 = vand.u32 4294901760, %v3513_v36  ;;  %v552_v30 = vand.u32 4294901760, %v551_v57  ;;  %v559_v29 = vand.u32 4294901760, %v558_v58  ;;  %v446_v51 = vsub.f32 %v3493_v52, %v4687_v8  ;;  %v3551_v8 = vld [vmem:[#allocation2 + $0xe8] sm:$0xff] }
  0x5a   : >> { %v3536_v48 = vsub.f32 %v3486_v59, %v4689_v33  ;;  %v440_v50 = vand.u32 4294901760, %v439_v53  ;;  %v565_v26 = vsub.f32 %v3508_v46, %v4691_v56  ;;  %v3549_v58 = vsub.f32 %v3502_v3, %v4695_v45  ;;  %v3560_v56 = vld [vmem:[#allocation2 + $0x60] sm:$0xff] }
  0x5b   : >> { %v572_v57 = vsub.f32 %v3513_v36, %v4692_v60  ;;  %v2591_v25 = vpack.c.bf16 %v559_v29, %v552_v30  ;;  %v447_v33 = vand.u32 4294901760, %v446_v51  ;;  %v3558_v53 = vpack.c.bf16 %v289_v13, %v286_v43 }
  0x5c   : >> { %4811 = vst [vmem:[#allocation9_spill] sm:$0xff] %v3536_v48  ;;  %4812 = vst [vmem:[#allocation10_spill] sm:$0xff] %v3549_v58  ;;  %v4698_v54 = vand.u32 4294901760, %v3536_v48  ;;  %v566_v60 = vand.u32 4294901760, %v565_v26  ;;  %v4697_v40 = vand.u32 4294901760, %v3549_v58  ;;  %v4701_v45 = vand.u32 4294901760, %v3538_v27 }
  0x5d   : >> { %v573_v35 = vand.u32 4294901760, %v572_v57  ;;  %2592 = vmatprep.subr.bf16.mxu1 %v2591_v25  ;;  %v2593_v29 = vpack.c.bf16 %v447_v33, %v440_v50  ;;  %2558 = vmatpush3.bf16.msra.mxu0 %v3558_v53  ;;  %v4700_v4 = vand.u32 4294901760, %v3551_v8  ;;  %v3575_v26 = vpack.c.bf16 %v343_v16, %v340_v15  ;;  %v3588_v50 = vld [vmem:[#allocation2 + $0xf8] sm:$0xff] }
  0x5e   : >> { %v453_v30 = vsub.f32 %v3536_v48, %v4698_v54  ;;  %v460_v25 = vsub.f32 %v3549_v58, %v4697_v40  ;;  %v3585_v13 = vsub.f32 %v3538_v27, %v4701_v45  ;;  %v4699_v51 = vand.u32 4294901760, %v3560_v56  ;;  %v3610_v40 = vld [vmem:[#allocation2 + $0x70] sm:$0xff] }
  0x5f   : >> { %v2595_v43 = vpack.c.bf16 %v573_v35, %v566_v60  ;;  %2594 = vmatpush3.bf16.msra.mxu1 %v2593_v29  ;;  %v3593_v44 = vsub.f32 %v3551_v8, %v4700_v4  ;;  %2560 = vmatprep.subr.bf16.mxu0 %v3575_v26  ;;  %v4702_v60 = vand.u32 4294901760, %v3564_v47  ;;  %v4815_v15 = vand.u32 4294901760, %v3436_v11 }
  0x60   : >> { %4813 = vst [vmem:[#allocation11_spill] sm:$0xff] %v3585_v13  ;;  %v454_v6 = vand.u32 4294901760, %v453_v30  ;;  %v4816_v16 = vand.u32 4294901760, %v3442_v31  ;;  %v461_v33 = vand.u32 4294901760, %v460_v25  ;;  %v4703_v57 = vand.u32 4294901760, %v3585_v13 }
  0x61   : >> { %4814 = vst [vmem:[#allocation12_spill] sm:$0xff] %v3593_v44  ;;  %2596 = vmatprep.subr.bf16.mxu1 %v2595_v43  ;;  %v3607_v29 = vsub.f32 %v3560_v56, %v4699_v51  ;;  %v4704_v30 = vand.u32 4294901760, %v3577_v9  ;;  %v4707_v54 = vand.u32 4294901760, %v3593_v44  ;;  %v3616_v31 = vsub.f32 %v3564_v47, %v4702_v60 }
  0x62   : >> { %v3601_v35 = vpack.c.bf16 %v4816_v16, %v4815_v15  ;;  %v361_v11 = vand.u32 4294901760, %v3588_v50  ;;  %v4820_v43 = vand.u32 4294901760, %v3453_v24  ;;  %v4821_v25 = vand.u32 4294901760, %v3455_v49  ;;  %v218_v16 = vld [vmem:[#allocation2 + $0x78] sm:$0xff] }
  0x63   : >> { %4818 = vst [vmem:[#allocation14_spill] sm:$0xff] %v3607_v29  ;;  %4819 = vst [vmem:[#allocation15_spill] sm:$0xff] %v3616_v31  ;;  %v2597_v51 = vpack.c.bf16 %v461_v33, %v454_v6  ;;  %v579_v4 = vsub.f32 %v3585_v13, %v4703_v57  ;;  %v4712_v45 = vand.u32 4294901760, %v3607_v29  ;;  %v3633_v60 = vsub.f32 %v3577_v9, %v4704_v30 }
  0x64   : >> { %4817 = vst [vmem:[#allocation13_spill] sm:$0xff] %v3601_v35  ;;  %2562 = vmatpush3.bf16.msra.mxu0 %v3601_v35  ;;  %v3624_v15 = vpack.c.bf16 %v4821_v25, %v4820_v43  ;;  %v586_v24 = vsub.f32 %v3593_v44, %v4707_v54  ;;  %v4717_v49 = vand.u32 4294901760, %v3616_v31  ;;  %v3640_v43 = vsub.f32 %v3588_v50, %v361_v11 }
  0x65   : >> { %4823 = vst [vmem:[#allocation17_spill] sm:$0xff] %v3633_v60  ;;  %v310_v6 = vand.u32 4294901760, %v3610_v40  ;;  %2598 = vmatpush3.bf16.msra.mxu1 %v2597_v51  ;;  %v580_v33 = vand.u32 4294901760, %v579_v4  ;;  %v467_v25 = vsub.f32 %v3607_v29, %v4712_v45  ;;  %v4727_v57 = vand.u32 4294901760, %v3633_v60 }
  0x66   : >> { %4822 = vst [vmem:[#allocation16_spill] sm:$0xff] %v3624_v15  ;;  %4824 = vst [vmem:[#allocation18_spill] sm:$0xff] %v3640_v43  ;;  %2564 = vmatprep.subr.bf16.mxu0 %v3624_v15  ;;  %v313_v30 = vand.u32 4294901760, %v218_v16  ;;  %v587_v13 = vand.u32 4294901760, %v586_v24  ;;  %v474_v54 = vsub.f32 %v3616_v31, %v4717_v49  ;;  %v4726_v50 = vand.u32 4294901760, %v3640_v43 }
  0x67   : >> { %v3653_v44 = vsub.f32 %v3610_v40, %v310_v6  ;;  %v468_v58 = vand.u32 4294901760, %v467_v25  ;;  %v593_v4 = vsub.f32 %v3633_v60, %v4727_v57  ;;  %v4826_v45 = vand.u32 4294901760, %v3486_v59  ;;  %v4852_v57 = vld [vmem:[#allocation11_spill] sm:$0xff] }
  0x68   : >> { %v3658_v51 = vsub.f32 %v218_v16, %v313_v30  ;;  %v4827_v24 = vand.u32 4294901760, %v3502_v3  ;;  %v2599_v48 = vpack.c.bf16 %v587_v13, %v580_v33  ;;  %v475_v49 = vand.u32 4294901760, %v474_v54 }
  0x69   : >> { %v600_v40 = vsub.f32 %v3640_v43, %v4726_v50  ;;  %v4725_v25 = vand.u32 4294901760, %v3653_v44  ;;  %v594_v31 = vand.u32 4294901760, %v593_v4 }
  0x6a   : >> { %4825 = vst [vmem:[#allocation19_spill] sm:$0xff] %v3658_v51  ;;  %v3664_v29 = vpack.c.bf16 %v4827_v24, %v4826_v45  ;;  %v4722_v36 = vand.u32 4294901760, %v3658_v51  ;;  %2600 = vmatprep.subr.bf16.mxu1 %v2599_v48  ;;  %v2601_v16 = vpack.c.bf16 %v475_v49, %v468_v58 }
  0x6b   : >> { %v601_v59 = vand.u32 4294901760, %v600_v40  ;;  %v481_v45 = vsub.f32 %v3653_v44, %v4725_v25 }
  0x6c   : >> { %4828 = vst [vmem:[#allocation20_spill] sm:$0xff] %v3664_v29  ;;  %2566 = vmatpush3.bf16.msra.mxu0 %v3664_v29  ;;  %v488_v54 = vsub.f32 %v3658_v51, %v4722_v36  ;;  %2602 = vmatpush3.bf16.msra.mxu1 %v2601_v16  ;;  %v4829_v36 = vand.u32 4294901760, %v3538_v27 }
  0x6d   : >> { %v2603_v3 = vpack.c.bf16 %v601_v59, %v594_v31  ;;  %v482_v13 = vand.u32 4294901760, %v481_v45  ;;  %v4830_v31 = vand.u32 4294901760, %v3551_v8  ;;  %v4832_v59 = vand.u32 4294901760, %v3560_v56 }
  0x6e   : >> { %v489_v33 = vand.u32 4294901760, %v488_v54  ;;  %v4833_v45 = vand.u32 4294901760, %v3564_v47  ;;  %v3112_v8 = vmov 6   ;;  %v2607_v47 = vpack.c.bf16 %v3258_v18, %v3256_v17 }
  0x6f   : >> { %2604 = vmatprep.subr.bf16.mxu1 %v2603_v3  ;;  %v3684_v16 = vpack.c.bf16 %v4830_v31, %v4829_v36  ;;  %v4835_v3 = vand.u32 4294901760, %v3577_v9  ;;  %v3698_v36 = vpack.c.bf16 %v313_v30, %v310_v6  ;;  %v177_v56 = vlaneseq }
  0x70   : >> { %v2605_v4 = vpack.c.bf16 %v489_v33, %v482_v13  ;;  %v3691_v54 = vpack.c.bf16 %v4833_v45, %v4832_v59  ;;  %v4723_v30 = vmov 0.0  }
  0x71   : >> { %4831 = vst [vmem:[#allocation21_spill] sm:$0xff] %v3684_v16  ;;  %2568 = vmatprep.subr.bf16.mxu0 %v3684_v16  ;;  %v3696_v27 = vpack.c.bf16 %v361_v11, %v4835_v3  ;;  %4837 = vst [vmem:[#allocation24_spill] sm:$0xff] %v3698_v36  ;;  %v3704_v13 = vand.u32 127, %v177_v56  ;;  %v2611_v3 = vpack.c.bf16 %v3277_v23, %v3272_v22 }
  0x72   : >> { %2606 = vmatpush3.bf16.msra.mxu1 %v2605_v4  ;;  %4834 = vst [vmem:[#allocation22_spill] sm:$0xff] %v3691_v54  ;;  %2570 = vmatpush3.bf16.msra.mxu0 %v3691_v54  ;;  %v4728_v4 = vmov 1.0   ;;  %v2617_v56 = vpack.c.bf16 %v3369_v5, %v3364_v37 }
  0x73   : >> { %2640 = vmatprep.subr.bf16.mxu1 %v3336_v62  ;;  %4836 = vst [vmem:[#allocation23_spill] sm:$0xff] %v3696_v27  ;;  %2572 = vmatprep.subr.bf16.mxu0 %v3696_v27 }
  0x76   : >> { %2574 = vmatpush3.bf16.msra.mxu0 %v3698_v36 }
  0x77   : >> { %2608 = vmatprep.subr.bf16.mxu0 %v2607_v47  ;;  %v2615_v47 = vpack.c.bf16 %v3346_v0, %v3341_v63 }
  0xaf   : >> { %v170_v48 = vpop.permute.xlu0 %169 }
  0xb0   : >> { %v171_v58 = vsub.s32 %v3237_v2, %v170_v48  ;;  %v3111_v2 = vmov 7  }
  0xb2   : >> { %v173_v49 = vsub.s32 0, %v171_v58 }
  0xb4   : >> { %v2100_v24 = vmin.u32 %v173_v49, %v171_v58 }
  0xb6   : >> { %vm175_vm0 = vcmp.lt.s32.totalorder %v2100_v24, 64 }
  0xb7   : >> { %v176_v40 = vsel %vm175_vm0, %v2100_v24, 64 }
  0xb8   : >> { %180 = vperm.xlu1 %2997, %v176_v40   ;;  %186 = vperm.xlu0 %2996, %v176_v40  }
  0xbc   : >> { %2998 = vset.pattern.permute.xlu1 %v3111_v2  ;;  %3000 = vset.pattern.permute.xlu0 %v3111_v2  ;;  %v2609_v2 = vpack.c.bf16 %v3267_v21, %v3263_v19 }
  0xbd   : >> { %198 = vperm.xlu1 %2998, %v176_v40  }
  0xc1   : >> { %2999 = vset.pattern.permute.xlu1 %v3112_v8  ;;  %v2613_v8 = vpack.c.bf16 %v3294_v32, %v3286_v28 }
  0xc2   : >> { %192 = vperm.xlu1 %2999, %v176_v40  }
 0x137   : >> { %v3706_v9 = vpop.permute.xlu1 %180  ;;  %v3708_v11 = vpop.permute.xlu0 %186 }
 0x138   : >> { %4838 = vst [vmem:[#allocation25_spill] sm:$0xff] %v3706_v9  ;;  %vm182_vm1 = vcmp.eq.s32.totalorder %v3706_v9, %v3704_v13  ;;  %vm188_vm2 = vcmp.eq.s32.totalorder %v3708_v11, %v3704_v13  ;;  %v4901_v11 = vand.u32 4294901760, %v3364_v37 }
 0x139   : >> { %v2101_v6 = vsel %vm182_vm1, 1.0, %v4723_v30  ;;  %v2102_v33 = vsel %vm188_vm2, 1.0, %v4723_v30  ;;  %2105 = vmatprep.mubr.msk.f32.mxu1 %vm188_vm2, %v4728_v4  ;;  %v3782_v30 = vld [vmem:[#allocation2 + $0x180] sm:$0xff] }
 0x13a   : >> { %v3726_v48 = vsub.f32 %v2101_v6, %v2101_v6  ;;  %v364_v58 = vsub.f32 %v2102_v33, %v2102_v33  ;;  %2106 = vmatmul.mubr.msk.f32.vlgmr.msra.gmra.mrb[0].mxu1 %vm182_vm1, %v4728_v4  ;;  %v2619_v6 = vpack.c.bf16 %v3382_v38, %v3377_v12  ;;  %v2621_v33 = vpack.c.bf16 %v3424_v61, %v3406_v14 }
 0x13b   : >> { %2642 = vmatpush3.bf16.msra.mxu1 %v3355_v7 }
 0x13c   : >> { %2644 = vmatprep.subr.bf16.mxu1 %v3388_v39  ;;  %v365_v49 = vand.u32 4294901760, %v364_v58  ;;  %v4730_v24 = vand.u32 4294901760, %v3726_v48 }
 0x13e   : >> { %848 = vmatprep.mubr.f32.mxu1 %v365_v49  ;;  %v366_v40 = vsub.f32 %v364_v58, %v365_v49  ;;  %v372_v31 = vsub.f32 %v3726_v48, %v4730_v24  ;;  %v3762_v49 = vld [vmem:[#allocation2 + $0x160] sm:$0xff]  ;;  %v4848_v24 = vld [vmem:[#allocation10_spill] sm:$0xff] }
 0x13f   : >> { %2646 = vmatpush3.bf16.msra.mxu1 %v3434_v10  ;;  %4839 = vst [vmem:[#allocation26_spill] sm:$0xff] %v3762_v49 }
 0x140   : >> { %2648 = vmatprep.subr.bf16.mxu1 %v3451_v20  ;;  %v367_v59 = vand.u32 4294901760, %v366_v40  ;;  %v373_v45 = vand.u32 4294901760, %v372_v31  ;;  %v3764_v40 = vld [vmem:[#allocation2 + $0x168] sm:$0xff]  ;;  %v3767_v31 = vld [vmem:[#allocation2 + $0x1f0] sm:$0xff] }
 0x141   : >> { %4840 = vst [vmem:[#allocation27_spill] sm:$0xff] %v3764_v40  ;;  %4841 = vst [vmem:[#allocation28_spill] sm:$0xff] %v3767_v31  ;;  %v4850_v25 = vand.u32 4294901760, %v3764_v40 }
 0x142   : >> { %368 = vmatprep.mubr.f32.mxu0 %v367_v59  ;;  %v3769_v59 = vld [vmem:[#allocation2 + $0x1f8] sm:$0xff] }
 0x143   : >> { %2650 = vmatpush3.bf16.msra.mxu1 %v3477_v55  ;;  %374 = vmatmul.mubr.f32.vlgmr.msra.gmra.mrb[0].mxu0 %v373_v45  ;;  %4842 = vst [vmem:[#allocation29_spill] sm:$0xff] %v3769_v59  ;;  %v2625_v45 = vpack.c.bf16 %v3493_v52, %v3482_v34  ;;  %v3802_v50 = vsub.f32 %v3764_v40, %v4850_v25  ;;  %v4856_v25 = vand.u32 4294901760, %v3769_v59 }
 0x144   : >> { %2610 = vmatpush3.bf16.msra.mxu0 %v2609_v2  ;;  %741 = vmatprep.mubr.f32.mxu0 %v364_v58  ;;  %v2623_v58 = vpack.c.bf16 %v3469_v42, %v3464_v41  ;;  %v4738_v2 = vand.u32 4294901760, %v3762_v49 }
 0x145   : >> { %2652 = vmatprep.subr.bf16.mxu1 %v3500_v1  ;;  %2612 = vmatprep.subr.bf16.mxu0 %v2611_v3  ;;  %4851 = vst [vmem:[#allocation10_spill] sm:$0xff] %v3802_v50 }
 0x146   : >> { %v3797_v9 = vsub.f32 %v3762_v49, %v4738_v2  ;;  %v4854_v2 = vand.u32 4294901760, %v3767_v31 }
 0x147   : >> { %2654 = vmatpush3.bf16.msra.mxu1 %v3558_v53 }
 0x148   : >> { %2614 = vmatpush3.bf16.msra.mxu0 %v2613_v8  ;;  %2656 = vmatprep.subr.bf16.mxu1 %v3575_v26  ;;  %v3776_v8 = vld [vmem:[#allocation2 + $0x170] sm:$0xff]  ;;  %v3817_v49 = vsub.f32 %v3767_v31, %v4854_v2 }
 0x149   : >> { %2616 = vmatprep.subr.bf16.mxu0 %v2615_v47  ;;  %4843 = vst [vmem:[#allocation30_spill] sm:$0xff] %v3776_v8  ;;  %v3778_v47 = vld [vmem:[#allocation2 + $0x178] sm:$0xff] }
 0x14a   : >> { %4844 = vst [vmem:[#allocation31_spill] sm:$0xff] %v3778_v47  ;;  %4855 = vst [vmem:[#allocation32_spill] sm:$0xff] %v3817_v49  ;;  %v4861_v31 = vand.u32 4294901760, %v3778_v47 }
 0x14b   : >> { %2658 = vmatpush3.bf16.msra.mxu1 %v3601_v35  ;;  %v4860_v35 = vand.u32 4294901760, %v3776_v8 }
 0x14c   : >> { %2618 = vmatpush3.bf16.msra.mxu0 %v2617_v56  ;;  %2660 = vmatprep.subr.bf16.mxu1 %v3624_v15  ;;  %v4845_v56 = vld [vmem:[#allocation8_spill] sm:$0xff]  ;;  %v3812_v15 = vld [vmem:[#allocation2 + $0x190] sm:$0xff] }
 0x14d   : >> { %2620 = vmatprep.subr.bf16.mxu0 %v2619_v6  ;;  %v2627_v6 = vpack.c.bf16 %v4845_v56, %v3508_v46  ;;  %4846 = vst [vmem:[#allocation8_spill] sm:$0xff] %v3782_v30  ;;  %v3834_v2 = vsub.f32 %v3776_v8, %v4860_v35 }
 0x14f   : >> { %2662 = vmatpush3.bf16.msra.mxu1 %v3664_v29  ;;  %v3810_v29 = vld [vmem:[#allocation2 + $0x108] sm:$0xff] }
 0x150   : >> { %2622 = vmatpush3.bf16.msra.mxu0 %v2621_v33  ;;  %2664 = vmatprep.subr.bf16.mxu1 %v3684_v16  ;;  %v3784_v33 = vld [vmem:[#allocation2 + $0x188] sm:$0xff]  ;;  %v3808_v16 = vld [vmem:[#allocation2 + $0x100] sm:$0xff] }
 0x151   : >> { %2624 = vmatprep.subr.bf16.mxu0 %v2623_v58  ;;  %v4847_v58 = vld [vmem:[#allocation9_spill] sm:$0xff] }
 0x152   : >> { %v2629_v3 = vpack.c.bf16 %v4848_v24, %v4847_v58  ;;  %4849 = vst [vmem:[#allocation9_spill] sm:$0xff] %v3797_v9 }
 0x153   : >> { %2666 = vmatpush3.bf16.msra.mxu1 %v3691_v54  ;;  %v4853_v54 = vld [vmem:[#allocation12_spill] sm:$0xff] }
 0x154   : >> { %2626 = vmatpush3.bf16.msra.mxu0 %v2625_v45  ;;  %2668 = vmatprep.subr.bf16.mxu1 %v3696_v27  ;;  %v2631_v4 = vpack.c.bf16 %v4853_v54, %v4852_v57  ;;  %v4858_v45 = vld [vmem:[#allocation14_spill] sm:$0xff]  ;;  %v4859_v27 = vld [vmem:[#allocation15_spill] sm:$0xff]  ;;  %v2635_v54 = vpack.c.bf16 %v3640_v43, %v3633_v60 }
 0x155   : >> { %2628 = vmatprep.subr.bf16.mxu0 %v2627_v6  ;;  %v3822_v6 = vsub.f32 %v3769_v59, %v4856_v25  ;;  %v2633_v40 = vpack.c.bf16 %v4859_v27, %v4858_v45  ;;  %v3829_v57 = vld [vmem:[#allocation2 + $0x198] sm:$0xff]  ;;  %v3839_v25 = vsub.f32 %v3778_v47, %v4861_v31  ;;  %v3844_v43 = vld [vmem:[#allocation2 + $0x110] sm:$0xff]  ;;  %v2637_v31 = vpack.c.bf16 %v3658_v51, %v3653_v44 }
 0x156   : >> { %v3846_v60 = vld [vmem:[#allocation2 + $0x118] sm:$0xff]  ;;  %v4863_v59 = vand.u32 4294901760, %v3784_v33  ;;  %v4864_v27 = vand.u32 4294901760, %v3726_v48  ;;  %v4865_v51 = vand.u32 4294901760, %v3797_v9  ;;  %v4891_v9 = vand.u32 4294901760, %v3272_v22 }
 0x157   : >> { %4857 = vst [vmem:[#allocation33_spill] sm:$0xff] %v3822_v6  ;;  %2670 = vmatpush3.bf16.msra.mxu1 %v3698_v36  ;;  %v4874_v47 = vand.u32 4294901760, %v3822_v6  ;;  %v4881_v6 = vand.u32 4294901760, %v3812_v15 }
 0x158   : >> { %2630 = vmatpush3.bf16.msra.mxu0 %v2629_v3  ;;  %2704 = vmatprep.subr.bf16.mxu1 %v3336_v62  ;;  %v4862_v3 = vand.u32 4294901760, %v3782_v30  ;;  %v3860_v36 = vsub.f32 %v3784_v33, %v4863_v59  ;;  %v4868_v59 = vmov 1.0  }
 0x159   : >> { %2632 = vmatprep.subr.bf16.mxu0 %v2631_v4  ;;  %v4873_v4 = vand.u32 4294901760, %v3817_v49 }
 0x15a   : >> { %v3855_v62 = vsub.f32 %v3782_v30, %v4862_v3  ;;  %852 = vmatmul.mubr.f32.vlgmr.msra.gmra.mrb[2].mxu1 %v4864_v27  ;;  %v4866_v3 = vand.u32 4294901760, %v3802_v50  ;;  %v3894_v27 = vld [vmem:[#allocation2 + $0x1a0] sm:$0xff]  ;;  %v4879_v50 = vand.u32 4294901760, %v3839_v25 }
 0x15b   : >> { %2706 = vmatpush3.bf16.msra.mxu1 %v3355_v7  ;;  %2109 = vmatprep.mubr.msk.f32.mxu1 %vm188_vm2, %v4868_v59  ;;  %v3900_v8 = vpack.c.bf16 %v4874_v47, %v4873_v4  ;;  %v3917_v47 = vsub.f32 %v3812_v15, %v4881_v6  ;;  %v4887_v4 = vand.u32 4294901760, %v3846_v60 }
 0x15c   : >> { %v3872_v30 = vpack.c.bf16 %v4866_v3, %v4865_v51  ;;  %2634 = vmatpush3.bf16.msra.mxu0 %v2633_v40  ;;  %2708 = vmatprep.subr.bf16.mxu1 %v3388_v39  ;;  %v4869_v51 = vand.u32 4294901760, %v3808_v16  ;;  %v4871_v3 = vand.u32 4294901760, %v3810_v29  ;;  %v4876_v39 = vand.u32 4294901760, %v3256_v17 }
 0x15d   : >> { %4875 = vst [vmem:[#allocation36_spill] sm:$0xff] %v3900_v8  ;;  %2636 = vmatprep.subr.bf16.mxu0 %v2635_v54  ;;  %v4877_v40 = vand.u32 4294901760, %v3258_v18  ;;  %4882 = vst [vmem:[#allocation38_spill] sm:$0xff] %v3917_v47  ;;  %v3919_v54 = vld [vmem:[#allocation2 + $0x1a8] sm:$0xff]  ;;  %v4883_v17 = vand.u32 4294901760, %v3829_v57 }
 0x15e   : >> { %4867 = vst [vmem:[#allocation14_spill] sm:$0xff] %v3872_v30  ;;  %v3887_v7 = vsub.f32 %v3808_v16, %v4869_v51  ;;  %v3892_v35 = vsub.f32 %v3810_v29, %v4871_v3  ;;  %v4878_v30 = vand.u32 4294901760, %v3834_v2  ;;  %v4766_v6 = vand.u32 4294901760, %v3919_v54 }
 0x15f   : >> { %v2671_v51 = vpack.c.bf16 %v4877_v40, %v4876_v39  ;;  %2710 = vmatpush3.bf16.msra.mxu1 %v3434_v10  ;;  %v3925_v18 = vsub.f32 %v3829_v57, %v4883_v17  ;;  %v3935_v39 = vsub.f32 %v3846_v60, %v4887_v4  ;;  %v4889_v10 = vand.u32 4294901760, %v3263_v19 }
 0x160   : >> { %4870 = vst [vmem:[#allocation34_spill] sm:$0xff] %v3887_v7  ;;  %4872 = vst [vmem:[#allocation35_spill] sm:$0xff] %v3892_v35  ;;  %v3910_v3 = vpack.c.bf16 %v4879_v50, %v4878_v30  ;;  %v4885_v50 = vand.u32 4294901760, %v3844_v43  ;;  %2638 = vmatpush3.bf16.msra.mxu0 %v2637_v31  ;;  %2712 = vmatprep.subr.bf16.mxu1 %v3451_v20  ;;  %v4890_v40 = vand.u32 4294901760, %v3267_v21  ;;  %v4759_v49 = vand.u32 4294901760, %v3887_v7  ;;  %v3950_v31 = vld [vmem:[#allocation2 + $0x120] sm:$0xff] }
 0x161   : >> { %4884 = vst [vmem:[#allocation39_spill] sm:$0xff] %v3925_v18  ;;  %4888 = vst [vmem:[#allocation41_spill] sm:$0xff] %v3935_v39  ;;  %2672 = vmatprep.subr.bf16.mxu0 %v2671_v51  ;;  %v4892_v4 = vand.u32 4294901760, %v3277_v23  ;;  %v4893_v20 = vand.u32 4294901760, %v3286_v28  ;;  %v4894_v19 = vand.u32 4294901760, %v3294_v32  ;;  %v4896_v51 = vand.u32 4294901760, %v3860_v36 }
 0x162   : >> { %4880 = vst [vmem:[#allocation37_spill] sm:$0xff] %v3910_v3  ;;  %v3930_v30 = vsub.f32 %v3844_v43, %v4885_v50  ;;  %v2673_v17 = vpack.c.bf16 %v4890_v40, %v4889_v10  ;;  %v4760_v50 = vand.u32 4294901760, %v3892_v35  ;;  %v4895_v10 = vand.u32 4294901760, %v3855_v62 }
 0x163   : >> { %v2675_v3 = vpack.c.bf16 %v4892_v4, %v4891_v9  ;;  %v2677_v21 = vpack.c.bf16 %v4894_v19, %v4893_v20  ;;  %v1364_v22 = vsub.f32 %v3860_v36, %v4896_v51  ;;  %v4763_v23 = vand.u32 4294901760, %v3917_v47  ;;  %744 = vmatmul.mubr.f32.vlgmr.msra.gmra.mrb[2].mxu0 %v3726_v48  ;;  %2714 = vmatpush3.bf16.msra.mxu1 %v3477_v55  ;;  %v3973_v19 = vld [vmem:[#allocation2 + $0x128] sm:$0xff] }
 0x164   : >> { %4886 = vst [vmem:[#allocation40_spill] sm:$0xff] %v3930_v30  ;;  %v1357_v40 = vsub.f32 %v3855_v62, %v4895_v10  ;;  %v4762_v9 = vand.u32 4294901760, %v3925_v18  ;;  %v4761_v28 = vand.u32 4294901760, %v3930_v30  ;;  %v4897_v4 = vand.u32 4294901760, %v3894_v27  ;;  %2674 = vmatpush3.bf16.msra.mxu0 %v2673_v17  ;;  %2107 = vmatprep.mubr.msk.f32.mxu0 %vm188_vm2, %v4868_v59 }
 0x165   : >> { %v4899_v55 = vand.u32 4294901760, %v3341_v63  ;;  %v4900_v48 = vand.u32 4294901760, %v3346_v0  ;;  %v1245_v51 = vsub.f32 %v3887_v7, %v4759_v49  ;;  %2716 = vmatprep.subr.bf16.mxu1 %v3500_v1  ;;  %2676 = vmatprep.subr.bf16.mxu0 %v2675_v3  ;;  %v4902_v63 = vand.u32 4294901760, %v3369_v5 }
 0x166   : >> { %v3971_v20 = vsub.f32 %v3894_v27, %v4897_v4  ;;  %v1252_v4 = vsub.f32 %v3892_v35, %v4760_v50  ;;  %v4903_v0 = vand.u32 4294901760, %v3377_v12  ;;  %v4002_v49 = vsub.f32 %v3919_v54, %v4766_v6  ;;  %v4932_v6 = vld [vmem:[#allocation18_spill] sm:$0xff] }
 0x167   : >> { %v2679_v10 = vpack.c.bf16 %v4900_v48, %v4899_v55  ;;  %v2681_v32 = vpack.c.bf16 %v4902_v63, %v4901_v11  ;;  %v4904_v55 = vand.u32 4294901760, %v3382_v38  ;;  %v1358_v50 = vand.u32 4294901760, %v1357_v40  ;;  %2718 = vmatpush3.bf16.msra.mxu1 %v3558_v53 }
 0x168   : >> { %4898 = vst [vmem:[#allocation42_spill] sm:$0xff] %v3971_v20  ;;  %4905 = vst [vmem:[#allocation43_spill] sm:$0xff] %v4002_v49  ;;  %v1365_v17 = vand.u32 4294901760, %v1364_v22  ;;  %v1371_v1 = vsub.f32 %v3917_v47, %v4763_v23  ;;  %v4764_v37 = vand.u32 4294901760, %v3973_v19  ;;  %v1378_v5 = vsub.f32 %v3925_v18, %v4762_v9  ;;  %2678 = vmatpush3.bf16.msra.mxu0 %v2677_v21  ;;  %v4202_v18 = vld [vmem:[#allocation2 + $0x1e0] sm:$0xff] }
 0x169   : >> { %v2683_v48 = vpack.c.bf16 %v4904_v55, %v4903_v0  ;;  %v1259_v12 = vsub.f32 %v3930_v30, %v4761_v28  ;;  %v4906_v38 = vand.u32 4294901760, %v3935_v39  ;;  %v4765_v40 = vand.u32 4294901760, %v3971_v20  ;;  %2720 = vmatprep.subr.bf16.mxu1 %v3575_v26  ;;  %2680 = vmatprep.subr.bf16.mxu0 %v2679_v10  ;;  %v4046_v10 = vld [vmem:[#allocation2 + $0x1b0] sm:$0xff] }
 0x16a   : >> { %v4907_v22 = vand.u32 4294901760, %v3406_v14  ;;  %v4908_v53 = vand.u32 4294901760, %v3424_v61  ;;  %v1246_v63 = vand.u32 4294901760, %v1245_v51  ;;  %v1253_v0 = vand.u32 4294901760, %v1252_v4 }
 0x16b   : >> { %v1266_v3 = vsub.f32 %v3935_v39, %v4906_v38  ;;  %v4909_v55 = vand.u32 4294901760, %v3950_v31  ;;  %v4911_v38 = vand.u32 4294901760, %v3464_v41  ;;  %v4912_v9 = vand.u32 4294901760, %v3469_v42 }
 0x16c   : >> { %v2685_v11 = vpack.c.bf16 %v4908_v53, %v4907_v22  ;;  %v4913_v26 = vand.u32 4294901760, %v3482_v34  ;;  %v4914_v14 = vand.u32 4294901760, %v3493_v52  ;;  %v4915_v61 = vand.u32 4294901760, %v3508_v46  ;;  %v4063_v53 = vld [vmem:[#allocation2 + $0x130] sm:$0xff]  ;;  %2682 = vmatpush3.bf16.msra.mxu0 %v2681_v32 }
 0x16d   : >> { %v4027_v28 = vsub.f32 %v3950_v31, %v4909_v55  ;;  %v2687_v21 = vpack.c.bf16 %v4912_v9, %v4911_v38  ;;  %v4916_v51 = vand.u32 4294901760, %v4845_v56  ;;  %v4767_v22 = vand.u32 4294901760, %v4002_v49  ;;  %v4061_v56 = vld [vmem:[#allocation2 + $0x1b8] sm:$0xff]  ;;  %v4920_v38 = vld [vmem:[#allocation13_spill] sm:$0xff]  ;;  %2684 = vmatprep.subr.bf16.mxu0 %v2683_v48 }
 0x16e   : >> { %v4037_v23 = vpack.c.bf16 %v4914_v14, %v4913_v26  ;;  %v4917_v41 = vand.u32 4294901760, %v4847_v58  ;;  %v4918_v42 = vand.u32 4294901760, %v4848_v24  ;;  %v4054_v34 = vpack.c.bf16 %v1365_v17, %v1358_v50  ;;  %v4065_v55 = vld [vmem:[#allocation2 + $0x138] sm:$0xff]  ;;  %2722 = vmatpush3.bf16.msra.mxu1 %v4920_v38  ;;  %v4071_v17 = vld [vmem:[#allocation2 + $0x1c0] sm:$0xff] }
 0x16f   : >> { %4910 = vst [vmem:[#allocation44_spill] sm:$0xff] %v4027_v28  ;;  %v4043_v4 = vpack.c.bf16 %v4916_v51, %v4915_v61  ;;  %v1372_v52 = vand.u32 4294901760, %v1371_v1  ;;  %v4059_v46 = vsub.f32 %v3973_v19, %v4764_v37  ;;  %v1379_v58 = vand.u32 4294901760, %v1378_v5  ;;  %v4921_v1 = vld [vmem:[#allocation16_spill] sm:$0xff]  ;;  %v4922_v14 = vld [vmem:[#allocation11_spill] sm:$0xff] }
 0x170   : >> { %v4052_v9 = vpack.c.bf16 %v4918_v42, %v4917_v41  ;;  %v1260_v24 = vand.u32 4294901760, %v1259_v12  ;;  %v1267_v26 = vand.u32 4294901760, %v1266_v3  ;;  %v1385_v50 = vsub.f32 %v3971_v20, %v4765_v40  ;;  %2724 = vmatprep.subr.bf16.mxu1 %v4921_v1  ;;  %v4924_v51 = vld [vmem:[#allocation12_spill] sm:$0xff]  ;;  %v4084_v3 = vpop.permute.xlu1 %198  ;;  %v4930_v40 = vld [vmem:[#allocation17_spill] sm:$0xff]  ;;  %2686 = vmatpush3.bf16.msra.mxu0 %v2685_v11 }
 0x171   : >> { %4919 = vst [vmem:[#allocation45_spill] sm:$0xff] %v4059_v46  ;;  %v4923_v61 = vand.u32 4294901760, %v4922_v14  ;;  %v4925_v41 = vand.u32 4294901760, %v4924_v51  ;;  %v4080_v37 = vpack.c.bf16 %v1253_v0, %v1246_v63  ;;  %4926 = vst [vmem:[#allocation13_spill] sm:$0xff] %v4084_v3  ;;  %v1392_v32 = vsub.f32 %v4002_v49, %v4767_v22  ;;  %v4928_v0 = vld [vmem:[#allocation15_spill] sm:$0xff]  ;;  %v4934_v38 = vld [vmem:[#allocation20_spill] sm:$0xff]  ;;  %2688 = vmatprep.subr.bf16.mxu0 %v2687_v21 }
 0x172   : >> { %v4927_v63 = vand.u32 4294901760, %v4858_v45  ;;  %v4929_v51 = vand.u32 4294901760, %v4928_v0  ;;  %v4931_v48 = vand.u32 4294901760, %v4930_v40  ;;  %v4933_v12 = vand.u32 4294901760, %v4932_v6  ;;  %2726 = vmatpush3.bf16.msra.mxu1 %v4934_v38  ;;  %v4119_v6 = vld [vmem:[#allocation2 + $0x140] sm:$0xff]  ;;  %v4137_v38 = vld [vmem:[#allocation2 + $0x1d0] sm:$0xff] }
 0x173   : >> { %v4078_v42 = vpack.c.bf16 %v4925_v41, %v4923_v61  ;;  %v4092_v61 = vld [vmem:[#allocation2 + $0x1c8] sm:$0xff]  ;;  %v4774_v22 = vand.u32 4294901760, %v4059_v46  ;;  %v4109_v14 = vpack.c.bf16 %v1379_v58, %v1372_v52  ;;  %v4111_v8 = vpack.c.bf16 %v1267_v26, %v1260_v24  ;;  %v4948_v26 = vld [vmem:[#allocation8_spill] sm:$0xff] }
 0x174   : >> { %v4098_v41 = vpack.c.bf16 %v4929_v51, %v4927_v63  ;;  %v4104_v5 = vpack.c.bf16 %v4933_v12, %v4931_v48  ;;  %v4935_v45 = vand.u32 4294901760, %v3653_v44  ;;  %v4936_v63 = vld [vmem:[#allocation19_spill] sm:$0xff]  ;;  %v1386_v40 = vand.u32 4294901760, %v1385_v50  ;;  %v4938_v12 = vld [vmem:[#allocation21_spill] sm:$0xff]  ;;  %2690 = vmatpush3.bf16.msra.mxu0 %v4037_v23 }
 0x175   : >> { %v4937_v0 = vand.u32 4294901760, %v4936_v63  ;;  %vm200_vm3 = vcmp.eq.s32.totalorder %v4084_v3, %v3704_v13  ;;  %2728 = vmatprep.subr.bf16.mxu1 %v4938_v12  ;;  %v4939_v52 = vand.u32 4294901760, %v4027_v28  ;;  %v4940_v44 = vand.u32 4294901760, %v4046_v10  ;;  %v4135_v50 = vld [vmem:[#allocation2 + $0x148] sm:$0xff]  ;;  %v4139_v48 = vld [vmem:[#allocation2 + $0x1d8] sm:$0xff]  ;;  %2692 = vmatprep.subr.bf16.mxu0 %v4043_v4  ;;  %v4960_v4 = vld [vmem:[#allocation24_spill] sm:$0xff] }
 0x176   : >> { %v1393_v11 = vand.u32 4294901760, %v1392_v32  ;;  %v4949_v1 = vand.u32 4294901760, %v4948_v26  ;;  %v4950_v21 = vand.u32 4294901760, %v3784_v33  ;;  %v4953_v20 = vmov 0.0  }
 0x177   : >> { %v4117_v51 = vpack.c.bf16 %v4937_v0, %v4935_v45  ;;  %v4127_v58 = vsub.f32 %v4027_v28, %v4939_v52  ;;  %v4132_v24 = vsub.f32 %v4046_v10, %v4940_v44  ;;  %v4942_v45 = vand.u32 4294901760, %v4061_v56 }
 0x178   : >> { %v4944_v0 = vand.u32 4294901760, %v4063_v53  ;;  %v4946_v52 = vand.u32 4294901760, %v4065_v55  ;;  %v4160_v32 = vpack.c.bf16 %v4950_v21, %v4949_v1  ;;  %v4951_v28 = vand.u32 4294901760, %v4071_v17  ;;  %2694 = vmatpush3.bf16.msra.mxu0 %v4052_v9 }
 0x179   : >> { %4941 = vst [vmem:[#allocation16_spill] sm:$0xff] %v4132_v24  ;;  %v4144_v63 = vsub.f32 %v4061_v56, %v4942_v45  ;;  %v1280_v45 = vsub.f32 %v4059_v46, %v4774_v22  ;;  %v2104_v26 = vsel %vm200_vm3, 1.0, %v4953_v20  ;;  %v4179_v22 = vld [vmem:[#allocation2 + $0x150] sm:$0xff]  ;;  %v4181_v46 = vld [vmem:[#allocation2 + $0x158] sm:$0xff]  ;;  %v1274_v49 = vand.u32 4294901760, %v4127_v58  ;;  %2696 = vmatprep.subr.bf16.mxu0 %v4078_v42 }
 0x17a   : >> { %v4149_v12 = vsub.f32 %v4063_v53, %v4944_v0  ;;  %v4154_v44 = vsub.f32 %v4065_v55, %v4946_v52  ;;  %v4168_v0 = vsub.f32 %v4071_v17, %v4951_v28  ;;  %v4954_v52 = vld [vmem:[#allocation22_spill] sm:$0xff]  ;;  %v4955_v28 = vld [vmem:[#allocation23_spill] sm:$0xff]  ;;  %v4956_v39 = vand.u32 4294901760, %v3808_v16 }
 0x17b   : >> { %4943 = vst [vmem:[#allocation11_spill] sm:$0xff] %v4144_v63  ;;  %2730 = vmatpush3.bf16.msra.mxu1 %v4954_v52  ;;  %v4957_v52 = vand.u32 4294901760, %v3810_v29  ;;  %v4958_v21 = vand.u32 4294901760, %v4092_v61  ;;  %v2775_v23 = vpack.c.bf16 %v1393_v11, %v1386_v40  ;;  %v4204_v29 = vld [vmem:[#allocation2 + $0x1e8] sm:$0xff]  ;;  %v4961_v40 = vand.u32 4294901760, %v4119_v6 }
 0x17c   : >> { %4945 = vst [vmem:[#allocation12_spill] sm:$0xff] %v4149_v12  ;;  %4947 = vst [vmem:[#allocation15_spill] sm:$0xff] %v4154_v44  ;;  %2732 = vmatprep.subr.bf16.mxu1 %v4955_v28  ;;  %v4962_v16 = vand.u32 4294901760, %v4135_v50  ;;  %v4967_v9 = vand.u32 4294901760, %v4149_v12  ;;  %2698 = vmatpush3.bf16.msra.mxu0 %v4098_v41  ;;  %v4975_v42 = vand.u32 4294901760, %v4204_v29  ;;  %v4990_v28 = vand.u32 4294901760, %v3919_v54 }
 0x17d   : >> { %4952 = vst [vmem:[#allocation17_spill] sm:$0xff] %v4168_v0  ;;  %v4190_v30 = vpack.c.bf16 %v4957_v52, %v4956_v39  ;;  %v4196_v33 = vsub.f32 %v4092_v61, %v4958_v21  ;;  %v4206_v39 = vsub.f32 %v2104_v26, %v2104_v26  ;;  %v4215_v11 = vsub.f32 %v4119_v6, %v4961_v40 }
 0x17e   : >> { %v4220_v58 = vsub.f32 %v4135_v50, %v4962_v16  ;;  %v4963_v26 = vand.u32 4294901760, %v4137_v38  ;;  %v4964_v21 = vand.u32 4294901760, %v4139_v48  ;;  %2700 = vmatprep.subr.bf16.mxu0 %v4104_v5 }
 0x17f   : >> { %4959 = vst [vmem:[#allocation18_spill] sm:$0xff] %v4196_v33  ;;  %2734 = vmatpush3.bf16.msra.mxu1 %v4960_v4  ;;  %v1281_v4 = vand.u32 4294901760, %v1280_v45  ;;  %v4968_v45 = vand.u32 4294901760, %v4154_v44 }
 0x180   : >> { %v4225_v52 = vsub.f32 %v4137_v38, %v4963_v26  ;;  %v4230_v1 = vsub.f32 %v4139_v48, %v4964_v21  ;;  %2768 = vmatprep.subr.bf16.mxu1 %v4054_v34  ;;  %v4965_v26 = vand.u32 4294901760, %v4132_v24  ;;  %v4966_v21 = vand.u32 4294901760, %v4144_v63  ;;  %2702 = vmatpush3.bf16.msra.mxu0 %v4117_v51 }
 0x181   : >> { %v1287_v34 = vsub.f32 %v4149_v12, %v4967_v9  ;;  %v1294_v16 = vsub.f32 %v4154_v44, %v4968_v45  ;;  %v4972_v9 = vand.u32 4294901760, %v4181_v46  ;;  %v4974_v44 = vand.u32 4294901760, %v4202_v18  ;;  %2736 = vmatprep.subr.bf16.mxu0 %v4160_v32 }
 0x182   : >> { %v1399_v47 = vsub.f32 %v4132_v24, %v4965_v26  ;;  %v1406_v35 = vsub.f32 %v4144_v63, %v4966_v21  ;;  %2110 = vmatmul.mubr.msk.f32.vlgmr.msra.gmra.mrb[4].mxu1 %vm182_vm1, %v4868_v59  ;;  %v4970_v26 = vand.u32 4294901760, %v4168_v0  ;;  %v4971_v21 = vand.u32 4294901760, %v4179_v22 }
 0x183   : >> { %v4266_v45 = vsub.f32 %v4181_v46, %v4972_v9  ;;  %2770 = vmatpush3.bf16.msra.mxu1 %v4080_v37  ;;  %2111 = vmatprep.mubr.msk.f32.mxu1 %vm200_vm3, %v4868_v59  ;;  %v4973_v9 = vand.u32 4294901760, %v4196_v33  ;;  %v4285_v3 = vsub.f32 %v4202_v18, %v4974_v44  ;;  %v4976_v12 = vand.u32 4294901760, %v4206_v39 }
 0x184   : >> { %v1413_v40 = vsub.f32 %v4168_v0, %v4970_v26  ;;  %v4261_v63 = vsub.f32 %v4179_v22, %v4971_v21  ;;  %2772 = vmatprep.subr.bf16.mxu1 %v4109_v14  ;;  %v4290_v26 = vsub.f32 %v4204_v29, %v4975_v42  ;;  %v2777_v21 = vpack.c.bf16 %v1281_v4, %v1274_v49 }
 0x185   : >> { %v1420_v37 = vsub.f32 %v4196_v33, %v4973_v9  ;;  %v1400_v41 = vand.u32 4294901760, %v1399_v47  ;;  %v1407_v0 = vand.u32 4294901760, %v1406_v35  ;;  %v1288_v14 = vand.u32 4294901760, %v1287_v34  ;;  %2108 = vmatmul.mubr.msk.f32.vlgmr.msra.gmra.mrb[4].mxu0 %vm182_vm1, %v4868_v59 }
 0x186   : >> { %v1228_v9 = vsub.f32 %v4206_v39, %v4976_v12  ;;  %v1295_v33 = vand.u32 4294901760, %v1294_v16  ;;  %v4977_v42 = vand.u32 4294901760, %v4215_v11  ;;  %v4978_v49 = vand.u32 4294901760, %v4220_v58  ;;  %2738 = vmatpush3.bf16.msra.mxu0 %v4190_v30 }
 0x187   : >> { %2774 = vmatpush3.bf16.msra.mxu1 %v4111_v8  ;;  %v4979_v47 = vand.u32 4294901760, %v4225_v52  ;;  %v4980_v12 = vand.u32 4294901760, %v4230_v1  ;;  %v1414_v8 = vand.u32 4294901760, %v1413_v40  ;;  %v1421_v16 = vand.u32 4294901760, %v1420_v37 }
 0x188   : >> { %v1301_v7 = vsub.f32 %v4215_v11, %v4977_v42  ;;  %v1308_v35 = vsub.f32 %v4220_v58, %v4978_v49  ;;  %2776 = vmatprep.subr.bf16.mxu1 %v2775_v23  ;;  %v2779_v49 = vpack.c.bf16 %v1407_v0, %v1400_v41  ;;  %v4981_v44 = vand.u32 4294901760, %v3812_v15 }
 0x189   : >> { %v1427_v5 = vsub.f32 %v4225_v52, %v4979_v47  ;;  %v1434_v4 = vsub.f32 %v4230_v1, %v4980_v12  ;;  %v4982_v47 = vand.u32 4294901760, %v3829_v57  ;;  %v4983_v12 = vand.u32 4294901760, %v3844_v43 }
 0x18a   : >> { %v4984_v51 = vand.u32 4294901760, %v3846_v60  ;;  %v1229_v40 = vand.u32 4294901760, %v1228_v9  ;;  %v2781_v37 = vpack.c.bf16 %v1295_v33, %v1288_v14  ;;  %v4985_v34 = vand.u32 4294901760, %v4261_v63 }
 0x18b   : >> { %v4319_v24 = vpack.c.bf16 %v4982_v47, %v4981_v44  ;;  %v4986_v0 = vand.u32 4294901760, %v4266_v45  ;;  %2778 = vmatpush3.bf16.msra.mxu1 %v2777_v21  ;;  %v1302_v57 = vand.u32 4294901760, %v1301_v7  ;;  %v1309_v60 = vand.u32 4294901760, %v1308_v35 }
 0x18c   : >> { %v4325_v23 = vpack.c.bf16 %v4984_v51, %v4983_v12  ;;  %v1315_v42 = vsub.f32 %v4261_v63, %v4985_v34  ;;  %v1428_v43 = vand.u32 4294901760, %v1427_v5  ;;  %v1435_v41 = vand.u32 4294901760, %v1434_v4  ;;  %1230 = vmatprep.mubr.f32.mxu0 %v1229_v40  ;;  %2780 = vmatprep.subr.bf16.mxu1 %v2779_v49  ;;  %v4993_v49 = vld [vmem:[#allocation9_spill] sm:$0xff] }
 0x18d   : >> { %v1322_v15 = vsub.f32 %v4266_v45, %v4986_v0  ;;  %v2783_v33 = vpack.c.bf16 %v1421_v16, %v1414_v8  ;;  %v4987_v14 = vand.u32 4294901760, %v4285_v3  ;;  %v4988_v44 = vand.u32 4294901760, %v4290_v26  ;;  %2740 = vmatprep.subr.bf16.mxu0 %v4319_v24 }
 0x18e   : >> { %v4989_v7 = vand.u32 4294901760, %v3894_v27  ;;  %v4991_v35 = vand.u32 4294901760, %v3950_v31  ;;  %v4992_v5 = vand.u32 4294901760, %v3973_v19  ;;  %v1316_v8 = vand.u32 4294901760, %v1315_v42  ;;  %v4995_v27 = vld [vmem:[#allocation10_spill] sm:$0xff]  ;;  %2742 = vmatpush3.bf16.msra.mxu0 %v4325_v23 }
 0x18f   : >> { %v1441_v9 = vsub.f32 %v4285_v3, %v4987_v14  ;;  %v1448_v34 = vsub.f32 %v4290_v26, %v4988_v44  ;;  %v1323_v16 = vand.u32 4294901760, %v1322_v15  ;;  %2782 = vmatpush3.bf16.msra.mxu1 %v2781_v37  ;;  %v2785_v47 = vpack.c.bf16 %v1309_v60, %v1302_v57  ;;  %v4997_v14 = vld [vmem:[#allocation32_spill] sm:$0xff]  ;;  %v4999_v37 = vld [vmem:[#allocation33_spill] sm:$0xff] }
 0x190   : >> { %v4349_v21 = vpack.c.bf16 %v4990_v28, %v4989_v7  ;;  %v4355_v4 = vpack.c.bf16 %v4992_v5, %v4991_v35  ;;  %v2787_v12 = vpack.c.bf16 %v1435_v41, %v1428_v43  ;;  %v4994_v51 = vand.u32 4294901760, %v4993_v49  ;;  %2784 = vmatprep.subr.bf16.mxu1 %v2783_v33 }
 0x191   : >> { %v4996_v0 = vand.u32 4294901760, %v4995_v27  ;;  %v1442_v31 = vand.u32 4294901760, %v1441_v9  ;;  %v1449_v19 = vand.u32 4294901760, %v1448_v34  ;;  %v4998_v44 = vand.u32 4294901760, %v4997_v14 }
 0x192   : >> { %v1329_v40 = vsub.f32 %v4993_v49, %v4994_v51  ;;  %v5000_v15 = vand.u32 4294901760, %v4999_v37  ;;  %2744 = vmatprep.subr.bf16.mxu0 %v4349_v21  ;;  %v5001_v60 = vand.u32 4294901760, %v4046_v10  ;;  %v5002_v43 = vand.u32 4294901760, %v4061_v56  ;;  %v4383_v51 = vpop.permute.xlu1 %192 }
 0x193   : >> { %v1336_v54 = vsub.f32 %v4995_v27, %v4996_v0  ;;  %v1455_v42 = vsub.f32 %v4997_v14, %v4998_v44  ;;  %v2789_v7 = vpack.c.bf16 %v1323_v16, %v1316_v8  ;;  %2786 = vmatpush3.bf16.msra.mxu1 %v2785_v47  ;;  %v5003_v34 = vand.u32 4294901760, %v3834_v2  ;;  %2746 = vmatpush3.bf16.msra.mxu0 %v4355_v4 }
 0x194   : >> { %v1462_v57 = vsub.f32 %v4999_v37, %v5000_v15  ;;  %v4375_v41 = vpack.c.bf16 %v5002_v43, %v5001_v60  ;;  %v1330_v33 = vand.u32 4294901760, %v1329_v40  ;;  %v5004_v35 = vand.u32 4294901760, %v3839_v25  ;;  %2788 = vmatprep.subr.bf16.mxu1 %v2787_v12 }
 0x195   : >> { %v1337_v9 = vand.u32 4294901760, %v1336_v54  ;;  %v1343_v28 = vsub.f32 %v3834_v2, %v5003_v34  ;;  %v5005_v10 = vand.u32 4294901760, %v4063_v53  ;;  %v5006_v56 = vand.u32 4294901760, %v4065_v55 }
 0x196   : >> { %v1350_v5 = vsub.f32 %v3839_v25, %v5004_v35  ;;  %v2791_v16 = vpack.c.bf16 %v1449_v19, %v1442_v31  ;;  %v1456_v47 = vand.u32 4294901760, %v1455_v42  ;;  %v1463_v40 = vand.u32 4294901760, %v1462_v57  ;;  %2748 = vmatprep.subr.bf16.mxu0 %v4375_v41 }
 0x197   : >> { %v4390_v8 = vpack.c.bf16 %v5006_v56, %v5005_v10  ;;  %v5007_v0 = vand.u32 4294901760, %v4071_v17  ;;  %v5008_v54 = vand.u32 4294901760, %v4092_v61  ;;  %vm194_vm4 = vcmp.eq.s32.totalorder %v4383_v51, %v3704_v13  ;;  %2790 = vmatpush3.bf16.msra.mxu1 %v2789_v7 }
 0x198   : >> { %v2793_v53 = vpack.c.bf16 %v1337_v9, %v1330_v33  ;;  %v1344_v12 = vand.u32 4294901760, %v1343_v28  ;;  %v1351_v55 = vand.u32 4294901760, %v1350_v5  ;;  %2792 = vmatprep.subr.bf16.mxu1 %v2791_v16  ;;  %v5009_v31 = vand.u32 4294901760, %v4119_v6 }
 0x199   : >> { %v4397_v44 = vpack.c.bf16 %v5008_v54, %v5007_v0  ;;  %2750 = vmatpush3.bf16.msra.mxu0 %v4390_v8  ;;  %v5010_v19 = vand.u32 4294901760, %v4135_v50  ;;  %v2795_v17 = vpack.c.bf16 %v1463_v40, %v1456_v47  ;;  %v5011_v61 = vand.u32 4294901760, %v4137_v38  ;;  %v5026_v47 = vld [vmem:[#allocation30_spill] sm:$0xff]  ;;  %v5028_v0 = vld [vmem:[#allocation31_spill] sm:$0xff] }
 0x19a   : >> { %v5012_v15 = vand.u32 4294901760, %v4139_v48  ;;  %v2103_v60 = vsel %vm194_vm4, 1.0, %v4953_v20  ;;  %v2797_v6 = vpack.c.bf16 %v1351_v55, %v1344_v12  ;;  %v5013_v50 = vand.u32 4294901760, %v4179_v22  ;;  %v5017_v22 = vld [vmem:[#allocation26_spill] sm:$0xff] }
 0x19b   : >> { %v4406_v42 = vpack.c.bf16 %v5010_v19, %v5009_v31  ;;  %2752 = vmatprep.subr.bf16.mxu0 %v4397_v44  ;;  %2794 = vmatpush3.bf16.msra.mxu1 %v2793_v53  ;;  %v5014_v43 = vand.u32 4294901760, %v4181_v46  ;;  %v4426_v38 = vsub.f32 %v2103_v60, %v2103_v60  ;;  %v5015_v48 = vand.u32 4294901760, %v4202_v18  ;;  %v5019_v46 = vld [vmem:[#allocation27_spill] sm:$0xff]  ;;  %v5021_v18 = vld [vmem:[#allocation28_spill] sm:$0xff]  ;;  %v5030_v31 = vld [vmem:[#allocation34_spill] sm:$0xff] }
 0x19c   : >> { %v4413_v57 = vpack.c.bf16 %v5012_v15, %v5011_v61  ;;  %2796 = vmatprep.subr.bf16.mxu1 %v2795_v17  ;;  %v5016_v33 = vand.u32 4294901760, %v4204_v29  ;;  %v5018_v9 = vand.u32 4294901760, %v5017_v22  ;;  %v5020_v34 = vand.u32 4294901760, %v5019_v46  ;;  %v5023_v29 = vld [vmem:[#allocation29_spill] sm:$0xff]  ;;  %v5031_v19 = vld [vmem:[#allocation35_spill] sm:$0xff]  ;;  %v5032_v15 = vld [vmem:[#allocation38_spill] sm:$0xff] }
 0x19d   : >> { %2754 = vmatpush3.bf16.msra.mxu0 %v4406_v42  ;;  %v4424_v7 = vpack.c.bf16 %v5014_v43, %v5013_v50  ;;  %v1233_v35 = vand.u32 4294901760, %v4426_v38  ;;  %v5022_v5 = vand.u32 4294901760, %v5021_v18  ;;  %v5024_v10 = vand.u32 4294901760, %v5023_v29  ;;  %v5033_v60 = vld [vmem:[#allocation39_spill] sm:$0xff]  ;;  %v5034_v50 = vld [vmem:[#allocation40_spill] sm:$0xff]  ;;  %v5035_v43 = vld [vmem:[#allocation41_spill] sm:$0xff] }
 0x19e   : >> { %2756 = vmatprep.subr.bf16.mxu0 %v4413_v57  ;;  %v4433_v20 = vpack.c.bf16 %v5016_v33, %v5015_v48  ;;  %v4441_v28 = vpack.c.bf16 %v5020_v34, %v5018_v9  ;;  %v5025_v16 = vand.u32 4294901760, %v4206_v39  ;;  %v5027_v40 = vand.u32 4294901760, %v5026_v47  ;;  %v5036_v33 = vld [vmem:[#allocation42_spill] sm:$0xff]  ;;  %v5037_v22 = vld [vmem:[#allocation43_spill] sm:$0xff]  ;;  %v5038_v46 = vld [vmem:[#allocation44_spill] sm:$0xff] }
 0x19f   : >> { %2798 = vmatpush3.bf16.msra.mxu1 %v2797_v6  ;;  %v4449_v56 = vpack.c.bf16 %v5024_v10, %v5022_v5  ;;  %v5029_v54 = vand.u32 4294901760, %v5028_v0  ;;  %v1234_v12 = vsub.f32 %v4426_v38, %v1233_v35  ;;  %v2799_v55 = vpack.c.bf16 %v3860_v36, %v3855_v62  ;;  %v5039_v34 = vld [vmem:[#allocation45_spill] sm:$0xff]  ;;  %v5040_v5 = vld [vmem:[#allocation16_spill] sm:$0xff]  ;;  %v5045_v0 = vld [vmem:[#allocation18_spill] sm:$0xff] }
 0x1a0   : >> { %2832 = vmatprep.subr.bf16.mxu1 %v4160_v32  ;;  %v2801_v17 = vpack.c.bf16 %v5031_v19, %v5030_v31  ;;  %v2803_v6 = vpack.c.bf16 %v5033_v60, %v5032_v15  ;;  %v2805_v48 = vpack.c.bf16 %v5035_v43, %v5034_v50  ;;  %v2807_v9 = vpack.c.bf16 %v5037_v22, %v5036_v33  ;;  %v5042_v10 = vld [vmem:[#allocation12_spill] sm:$0xff] }
 0x1a1   : >> { %2758 = vmatpush3.bf16.msra.mxu0 %v4424_v7  ;;  %v4464_v53 = vpack.c.bf16 %v5029_v54, %v5027_v40  ;;  %v1235_v61 = vand.u32 4294901760, %v1234_v12  ;;  %v2809_v18 = vpack.c.bf16 %v5039_v34, %v5038_v46  ;;  %v5044_v40 = vld [vmem:[#allocation17_spill] sm:$0xff]  ;;  %v2817_v12 = vpack.c.bf16 %v4220_v58, %v4215_v11 }
 0x1a2   : >> { %2760 = vmatprep.subr.bf16.mxu0 %v4433_v20  ;;  %2112 = vmatmul.mubr.msk.f32.vlgmr.msra.gmra.mrb[6].mxu1 %vm194_vm4, %v4868_v59  ;;  %v2815_v54 = vpack.c.bf16 %v5045_v0, %v5044_v40 }
 0x1a3   : >> { %2834 = vmatpush3.bf16.msra.mxu1 %v4190_v30  ;;  %1710 = vmatprep.mubr.f32.mxu1 %v5025_v16  ;;  %v5043_v16 = vld [vmem:[#allocation15_spill] sm:$0xff] }
 0x1a4   : >> { %2836 = vmatprep.subr.bf16.mxu1 %v4319_v24  ;;  %v2813_v47 = vpack.c.bf16 %v5043_v16, %v5042_v10 }
 0x1a5   : >> { %2762 = vmatpush3.bf16.msra.mxu0 %v4441_v28 }
 0x1a6   : >> { %2764 = vmatprep.subr.bf16.mxu0 %v4449_v56 }
 0x1a7   : >> { %2838 = vmatpush3.bf16.msra.mxu1 %v4325_v23 }
 0x1a8   : >> { %2840 = vmatprep.subr.bf16.mxu1 %v4349_v21 }
 0x1a9   : >> { %2766 = vmatpush3.bf16.msra.mxu0 %v4464_v53 }
 0x1aa   : >> { %2800 = vmatprep.subr.bf16.mxu0 %v2799_v55  ;;  %v2819_v55 = vpack.c.bf16 %v4230_v1, %v4225_v52 }
 0x1ab   : >> { %2842 = vmatpush3.bf16.msra.mxu1 %v4355_v4 }
 0x1ac   : >> { %1236 = vmatmul.mubr.f32.vlgmr.msra.gmra.mrb[6].mxu0 %v1235_v61  ;;  %2844 = vmatprep.subr.bf16.mxu1 %v4375_v41  ;;  %v2823_v61 = vpack.c.bf16 %v4290_v26, %v4285_v3 }
 0x1ad   : >> { %2802 = vmatpush3.bf16.msra.mxu0 %v2801_v17  ;;  %1603 = vmatprep.mubr.f32.mxu0 %v4206_v39  ;;  %v5041_v39 = vld [vmem:[#allocation11_spill] sm:$0xff]  ;;  %v2821_v17 = vpack.c.bf16 %v4266_v45, %v4261_v63 }
 0x1ae   : >> { %2804 = vmatprep.subr.bf16.mxu0 %v2803_v6  ;;  %v2811_v29 = vpack.c.bf16 %v5041_v39, %v5040_v5  ;;  %v2825_v6 = vpack.c.bf16 %v4995_v27, %v4993_v49  ;;  %v5047_v49 = vand.u32 4294901760, %v3855_v62  ;;  %v5048_v27 = vand.u32 4294901760, %v3860_v36 }
 0x1af   : >> { %2846 = vmatpush3.bf16.msra.mxu1 %v4390_v8  ;;  %v5053_v36 = vand.u32 4294901760, %v5034_v50  ;;  %v5054_v62 = vand.u32 4294901760, %v5035_v43 }
 0x1b0   : >> { %2848 = vmatprep.subr.bf16.mxu1 %v4397_v44 }
 0x1b1   : >> { %2806 = vmatpush3.bf16.msra.mxu0 %v2805_v48  ;;  %v2827_v48 = vpack.c.bf16 %v4999_v37, %v4997_v14  ;;  %v2863_v14 = vpack.c.bf16 %v5048_v27, %v5047_v49  ;;  %v5050_v37 = vand.u32 4294901760, %v5031_v19  ;;  %v5058_v19 = vand.u32 4294901760, %v5039_v34 }
 0x1b2   : >> { %2808 = vmatprep.subr.bf16.mxu0 %v2807_v9 }
 0x1b3   : >> { %2850 = vmatpush3.bf16.msra.mxu1 %v4406_v42 }
 0x1b4   : >> { %2852 = vmatprep.subr.bf16.mxu1 %v4413_v57 }
 0x1b5   : >> { %2810 = vmatpush3.bf16.msra.mxu0 %v2809_v18  ;;  %v5067_v18 = vand.u32 4294901760, %v4225_v52  ;;  %v5075_v52 = vld [vmem:[#allocation37_spill] sm:$0xff] }
 0x1b6   : >> { %2812 = vmatprep.subr.bf16.mxu0 %v2811_v29 }
 0x1b7   : >> { %2854 = vmatpush3.bf16.msra.mxu1 %v4424_v7 }
 0x1b8   : >> { %2856 = vmatprep.subr.bf16.mxu1 %v4433_v20 }
 0x1b9   : >> { %2814 = vmatpush3.bf16.msra.mxu0 %v2813_v47 }
 0x1ba   : >> { %2816 = vmatprep.subr.bf16.mxu0 %v2815_v54 }
 0x1bb   : >> { %2858 = vmatpush3.bf16.msra.mxu1 %v4441_v28 }
 0x1bc   : >> { %2860 = vmatprep.subr.bf16.mxu1 %v4449_v56 }
 0x1bd   : >> { %2818 = vmatpush3.bf16.msra.mxu0 %v2817_v12 }
 0x1be   : >> { %2820 = vmatprep.subr.bf16.mxu0 %v2819_v55 }
 0x1bf   : >> { %2862 = vmatpush3.bf16.msra.mxu1 %v4464_v53 }
 0x1c0   : >> { %2896 = vmatprep.subr.bf16.mxu1 %v4160_v32  ;;  %v2829_v32 = vpack.c.bf16 %v3839_v25, %v3834_v2  ;;  %v5052_v2 = vand.u32 4294901760, %v5033_v60  ;;  %v5059_v60 = vand.u32 4294901760, %v5040_v5  ;;  %v5068_v5 = vand.u32 4294901760, %v4230_v1  ;;  %v5073_v1 = vld [vmem:[#allocation14_spill] sm:$0xff] }
 0x1c1   : >> { %2822 = vmatpush3.bf16.msra.mxu0 %v2821_v17 }
 0x1c2   : >> { %2824 = vmatprep.subr.bf16.mxu0 %v2823_v61  ;;  %1714 = vmatmul.mubr.f32.vlgmr.msra.gmra.mrb[8].mxu1 %v1233_v35 }
 0x1c3   : >> { %2898 = vmatpush3.bf16.msra.mxu1 %v4190_v30  ;;  %2115 = vmatprep.mubr.msk.f32.mxu1 %vm200_vm3, %v4868_v59  ;;  %v5049_v30 = vand.u32 4294901760, %v5030_v31 }
 0x1c4   : >> { %2900 = vmatprep.subr.bf16.mxu1 %v4319_v24  ;;  %v5051_v24 = vand.u32 4294901760, %v5032_v15 }
 0x1c5   : >> { %2826 = vmatpush3.bf16.msra.mxu0 %v2825_v6  ;;  %v2865_v35 = vpack.c.bf16 %v5050_v37, %v5049_v30 }
 0x1c6   : >> { %2828 = vmatprep.subr.bf16.mxu0 %v2827_v48  ;;  %v2867_v25 = vpack.c.bf16 %v5052_v2, %v5051_v24 }
 0x1c7   : >> { %2902 = vmatpush3.bf16.msra.mxu1 %v4325_v23  ;;  %v2869_v23 = vpack.c.bf16 %v5054_v62, %v5053_v36 }
 0x1c8   : >> { %2904 = vmatprep.subr.bf16.mxu1 %v4349_v21  ;;  %v5055_v21 = vand.u32 4294901760, %v5036_v33  ;;  %v5063_v33 = vand.u32 4294901760, %v5044_v40 }
 0x1c9   : >> { %2830 = vmatpush3.bf16.msra.mxu0 %v2829_v32 }
 0x1ca   : >> { %2864 = vmatprep.subr.bf16.mxu0 %v2863_v14 }
 0x1cb   : >> { %2906 = vmatpush3.bf16.msra.mxu1 %v4355_v4  ;;  %v5057_v4 = vand.u32 4294901760, %v5038_v46 }
 0x1cc   : >> { %1606 = vmatmul.mubr.f32.vlgmr.msra.gmra.mrb[8].mxu0 %v4426_v38  ;;  %2908 = vmatprep.subr.bf16.mxu1 %v4375_v41  ;;  %v5056_v38 = vand.u32 4294901760, %v5037_v22  ;;  %v5060_v41 = vand.u32 4294901760, %v5041_v39  ;;  %v5064_v22 = vand.u32 4294901760, %v5045_v0  ;;  %v2883_v39 = vpack.c.bf16 %v5068_v5, %v5067_v18 }
 0x1cd   : >> { %2866 = vmatpush3.bf16.msra.mxu0 %v2865_v35  ;;  %2113 = vmatprep.mubr.msk.f32.mxu0 %vm200_vm3, %v4868_v59  ;;  %v2873_v15 = vpack.c.bf16 %v5058_v19, %v5057_v4 }
 0x1ce   : >> { %2868 = vmatprep.subr.bf16.mxu0 %v2867_v25  ;;  %v2871_v31 = vpack.c.bf16 %v5056_v38, %v5055_v21  ;;  %v2875_v50 = vpack.c.bf16 %v5060_v41, %v5059_v60  ;;  %v2879_v46 = vpack.c.bf16 %v5064_v22, %v5063_v33 }
 0x1cf   : >> { %2910 = vmatpush3.bf16.msra.mxu1 %v4390_v8  ;;  %v5061_v8 = vand.u32 4294901760, %v5042_v10 }
 0x1d0   : >> { %2912 = vmatprep.subr.bf16.mxu1 %v4397_v44  ;;  %v5062_v44 = vand.u32 4294901760, %v5043_v16 }
 0x1d1   : >> { %2870 = vmatpush3.bf16.msra.mxu0 %v2869_v23 }
 0x1d2   : >> { %2872 = vmatprep.subr.bf16.mxu0 %v2871_v31  ;;  %v2877_v43 = vpack.c.bf16 %v5062_v44, %v5061_v8 }
 0x1d3   : >> { %2914 = vmatpush3.bf16.msra.mxu1 %v4406_v42  ;;  %v5065_v42 = vand.u32 4294901760, %v4215_v11  ;;  %v5072_v11 = vand.u32 4294901760, %v4290_v26 }
 0x1d4   : >> { %2916 = vmatprep.subr.bf16.mxu1 %v4413_v57  ;;  %v5066_v57 = vand.u32 4294901760, %v4220_v58  ;;  %v5071_v58 = vand.u32 4294901760, %v4285_v3 }
 0x1d5   : >> { %2874 = vmatpush3.bf16.msra.mxu0 %v2873_v15 }
 0x1d6   : >> { %2876 = vmatprep.subr.bf16.mxu0 %v2875_v50  ;;  %v2881_v34 = vpack.c.bf16 %v5066_v57, %v5065_v42  ;;  %v2887_v10 = vpack.c.bf16 %v5072_v11, %v5071_v58 }
 0x1d7   : >> { %2918 = vmatpush3.bf16.msra.mxu1 %v4424_v7  ;;  %v5069_v7 = vand.u32 4294901760, %v4261_v63  ;;  %v5074_v63 = vld [vmem:[#allocation36_spill] sm:$0xff] }
 0x1d8   : >> { %2920 = vmatprep.subr.bf16.mxu1 %v4433_v20  ;;  %v5070_v20 = vand.u32 4294901760, %v4266_v45 }
 0x1d9   : >> { %2878 = vmatpush3.bf16.msra.mxu0 %v2877_v43 }
 0x1da   : >> { %2880 = vmatprep.subr.bf16.mxu0 %v2879_v46  ;;  %v2885_v29 = vpack.c.bf16 %v5070_v20, %v5069_v7 }
 0x1db   : >> { %2922 = vmatpush3.bf16.msra.mxu1 %v4441_v28 }
 0x1dc   : >> { %2924 = vmatprep.subr.bf16.mxu1 %v4449_v56 }
 0x1dd   : >> { %2882 = vmatpush3.bf16.msra.mxu0 %v2881_v34 }
 0x1de   : >> { %2884 = vmatprep.subr.bf16.mxu0 %v2883_v39 }
 0x1df   : >> { %2926 = vmatpush3.bf16.msra.mxu1 %v4464_v53 }
 0x1e1   : >> { %2886 = vmatpush3.bf16.msra.mxu0 %v2885_v29 }
 0x1e2   : >> { %2888 = vmatprep.subr.bf16.mxu0 %v2887_v10  ;;  %2116 = vmatmul.mubr.msk.f32.vlgmr.msra.gmra.mrb[10].mxu1 %vm194_vm4, %v4868_v59 }
 0x1e5   : >> { %2890 = vmatpush3.bf16.msra.mxu0 %v5073_v1 }
 0x1e6   : >> { %2892 = vmatprep.subr.bf16.mxu0 %v5074_v63 }
 0x1e9   : >> { %2894 = vmatpush3.bf16.msra.mxu0 %v5075_v52 }
 0x1ec   : >> { %2114 = vmatmul.mubr.msk.f32.vlgmr.msra.gmra.mrb[10].mxu0 %vm194_vm4, %v4868_v59 }
 0x20d   : >> { %v2190_v3 = vpop.f32.mrb[0].mxu1 }
 0x20e   : >> { %v2191_v45 = vpop.f32.mrb[1].mxu1 }
 0x20f   : >> { %v2192_v26 = vadd.f32 %v2191_v45, %v2190_v3 }
 0x216   : >> { %v2155_v28 = vpop.f32.mrb[0].mxu0 }
 0x217   : >> { %v2156_v56 = vpop.f32.mrb[1].mxu0 }
 0x218   : >> { %v2157_v53 = vadd.f32 %v2156_v56, %v2155_v28 }
 0x21a   : >> { %v608_v16 = vadd.f32 %v2192_v26, %v2157_v53 }
 0x22d   : >> { %v2260_v47 = vpop.f32.mrb[2].mxu1 }
 0x22e   : >> { %v2261_v40 = vpop.f32.mrb[3].mxu1 }
 0x22f   : >> { %v2262_v0 = vadd.f32 %v2261_v40, %v2260_v47 }
 0x236   : >> { %v2225_v54 = vpop.f32.mrb[2].mxu0 }
 0x237   : >> { %v2226_v12 = vpop.f32.mrb[3].mxu0 }
 0x238   : >> { %v2227_v55 = vadd.f32 %v2226_v12, %v2225_v54 }
 0x23a   : >> { %v746_v17 = vadd.f32 %v2227_v55, %v608_v16 }
 0x23c   : >> { %v854_v61 = vadd.f32 %v2262_v0, %v746_v17 }
 0x255   : >> { %v2330_v6 = vpop.f32.mrb[4].mxu1 }
 0x256   : >> { %v2331_v48 = vpop.f32.mrb[5].mxu1 }
 0x257   : >> { %v2332_v9 = vadd.f32 %v2331_v48, %v2330_v6 }
 0x258   : >> { %v2295_v13 = vpop.f32.mrb[4].mxu0 }
 0x259   : >> { %v2296_v59 = vpop.f32.mrb[5].mxu0 }
 0x25a   : >> { %v2297_v51 = vadd.f32 %v2296_v59, %v2295_v13 }
 0x25c   : >> { %v1022_v32 = vadd.f32 %v2297_v51, %v854_v61 }
 0x25e   : >> { %v1126_v49 = vadd.f32 %v2332_v9, %v1022_v32 }
 0x275   : >> { %v2400_v27 = vpop.f32.mrb[6].mxu1 }
 0x276   : >> { %v2401_v14 = vpop.f32.mrb[7].mxu1 }
 0x277   : >> { %v2402_v30 = vadd.f32 %v2401_v14, %v2400_v27 }
 0x27f   : >> { %v2365_v37 = vpop.f32.mrb[6].mxu0 }
 0x280   : >> { %v2366_v35 = vpop.f32.mrb[7].mxu0 }
 0x281   : >> { %v2367_v24 = vadd.f32 %v2366_v35, %v2365_v37 }
 0x283   : >> { %v1238_v2 = vadd.f32 %v2367_v24, %v1126_v49 }
 0x285   : >> { %v1470_v25 = vadd.f32 %v2402_v30, %v1238_v2 }
 0x295   : >> { %v2470_v36 = vpop.f32.mrb[8].mxu1 }
 0x296   : >> { %v2471_v62 = vpop.f32.mrb[9].mxu1 }
 0x297   : >> { %v2472_v23 = vadd.f32 %v2471_v62, %v2470_v36 }
 0x29f   : >> { %v2435_v21 = vpop.f32.mrb[8].mxu0 }
 0x2a0   : >> { %v2436_v38 = vpop.f32.mrb[9].mxu0 }
 0x2a1   : >> { %v2437_v31 = vadd.f32 %v2436_v38, %v2435_v21 }
 0x2a3   : >> { %v1608_v4 = vadd.f32 %v2437_v31, %v1470_v25 }
 0x2a5   : >> { %v1716_v19 = vadd.f32 %v2472_v23, %v1608_v4 }
 0x2b5   : >> { %v2540_v15 = vpop.f32.mrb[10].mxu1 }
 0x2b6   : >> { %v2541_v60 = vpop.f32.mrb[11].mxu1 }
 0x2b7   : >> { %v2542_v41 = vadd.f32 %v2541_v60, %v2540_v15 }
 0x2bf   : >> { %v2505_v50 = vpop.f32.mrb[10].mxu0 }
 0x2c0   : >> { %v2506_v8 = vpop.f32.mrb[11].mxu0 }
 0x2c1   : >> { %v2507_v44 = vadd.f32 %v2506_v8, %v2505_v50  ;;  %164 = sbr.rel (!%p162_p6) target bundleno = 58 (0x3a), region = 77 }
 0x2c3   : >> { %v1884_v43 = vadd.f32 %v2507_v44, %v1716_v19 }
 0x2c5   : >> { %v1988_v33 = vadd.f32 %v2542_v41, %v1884_v43 }
 0x2c7   : >> { %1992 = vst [vmem:[%s1991_s30] sm:$0xff] %v1988_v33 }
 0x2c8   : > { %3042 = shalt.err (!%p3039_p8)
}
 0x2c9   : > { %s3043_s14 = scalar_lea.hbm %s4614_s6, 256  ;;  %s3047_s24 = scalar_lea.hbm %s4665_s2, 1024 }
 0x2ca   : > { %p3044_p11 = scmp.ne.s32.totalorder %s4614_s6, %s3043_s14  ;;  %p3048_p0 = scmp.lt.u32.totalorder %s4614_s6, %s4665_s2 }
 0x2cb   : > { %p3049_p5 = scmp.lt.u32.totalorder %s3047_s24, %s3043_s14  ;;  %p3051_p9 = scmp.lt.u32.totalorder %s3043_s14, %s4614_s6 }
 0x2cc   : > { %p3045_p13 = pnand %p3044_p11, %p5076_p10 }
 0x2cd   : > { %p3050_p6 = por %p3049_p5, %p3048_p0 }
 0x2ce   : > { %p3046_p1 = pneg %p3045_p13 }
 0x2cf   : > { %p3052_p12 = por %p3051_p9, %p3050_p6 }
 0x2d1   : > { %p3053_p2 = pnand %p3052_p12, %p3046_p1 }
 0x2d3   : > { %3056 = shalt.err (!%p3053_p2)
}
 0x2d4   : > { %s3116_s27 = smov 128   ;;  %s3117_s28 = smov 8  }
 0x2d5   : > { %2931 = dma.vmem_to_hbm [thread:$0]  (%p5076_p10), %s4618_s7, 256, %s4614_s6, %s4622_s8, %s3116_s27, %s3116_s27, %s3117_s28  }
 0x2d6 PF: > { %p2943_p3 = scmp.ge.s32.totalorder %s3099_s12, 2  ;;  %s2022_s29 = sand.u32 1, %s3087_s9  }
 0x2d7   : > { %p5077_p4 = scmp.ne.s32.totalorder %s4804_s20, 0  ;;  %s2023_s30 = scalar_lea.sflag [#allocation4], %s2022_s29 }
 0x2d9   : > { %p2938_p7 = pnand %p2943_p3, %p5077_p4 }
 0x2db   : > { %3082 = dma.done.wait (!%p2938_p7), %s2023_s30, 256  }
 0x2dc   : > { %3084 = vsyncadd (!%p2938_p7), %s2023_s30, 4294967040  ;;  %p13_p8 = scmp.ge.s32.totalorder %s3158_s15, 6   ;;  %s5078_s9 = smov %s3091_s10 }
 0x2dd   : > { %s5079_s10 = smov %s3095_s11  ;;  %s5080_s11 = smov %s3169_s18 }
 0x2de   : > { %s5081_s12 = smov %s3158_s15  ;;  %15 = sbr.rel (!%p13_p8) target bundleno = 4 (0x4), region = 88 }
 0x2e5   :  { %2028 = vsyncpa [#allocation3], 1 }
 0x2e6   :  { %2030 = vsyncpa [#allocation3 + $0x1], 1 }
 0x2e7   :  { %2031 = vsyncpa [#allocation4], 1 }
 0x2e8   :  { %2033 = vsyncpa [#allocation4 + $0x1], 1 }

</bundles_post_ra>
